<compile_context>
chip_gen: v5e
topology: v5e:2x2
jax: 0.10.0
libtpu: 0.0.40
codegen_flags: <defaults>
</compile_context>

<pallas_src>
import functools
import math

import jax
import jax.numpy as jnp
from jax.experimental import pallas as pl
from jax.experimental.pallas import tpu as pltpu

# ---- small test configuration (module defaults are C=8, blocks=6, D=128, H=8)
B = 4            # batch
TB = 2           # batch elements per grid step (grid = B // TB = 2, even for v7x)
C = 4            # in_channels
S = 8            # sequence_len
D = 32           # embed_dim (mel bins == transformer embed dim)
H = 4            # num_heads
NUM_BLOCKS = 2   # num_encoder_blocks
EXPANSION = 2
E = C * EXPANSION          # depthwise out channels
KH = KW = 5
PAD = 2
FFN = 4 * D                # assumed encoder-block feed-forward hidden dim
BN_EPS = 1e-5
LN_EPS = 1e-5


def _layernorm(x, gamma, beta):
    mu = jnp.mean(x, axis=-1, keepdims=True)
    var = jnp.mean((x - mu) ** 2, axis=-1, keepdims=True)
    return (x - mu) * jax.lax.rsqrt(var + LN_EPS) * gamma + beta


# --------------------------------------------------------------------------
# Fused kernel: BN+ReLU -> folded 5x5 conv (one matmul) -> ReLU
#               -> all transformer encoder blocks.  TB batch rows per step.
# --------------------------------------------------------------------------
def fused_forward_kernel(x_ref, bn_s_ref, bn_b_ref, cw_ref, cb_ref,
                         wqkv_ref, bqkv_ref, wo_ref, bo_ref, g1_ref, be1_ref,
                         w1_ref, b1_ref, w2_ref, b2_ref, g2_ref, be2_ref,
                         o_ref, pad_ref, *, tb, n_ch, seq, dim, ksize, pad,
                         heads, n_blocks):
    f32, bf16 = jnp.float32, jnp.bfloat16
    cd = n_ch * dim
    m = tb * seq
    dh = dim // heads

    # ----------------- BN (running stats) + ReLU, one vectorized pass --------
    act = jnp.maximum(x_ref[...] * bn_s_ref[...] + bn_b_ref[...], 0.0)  # (TB,S,CD)

    # ----------- zero-halo scratch along the sequence (sublane) axis ---------
    pad_ref[...] = jnp.zeros((tb, seq + 2 * pad, cd), f32)
    pad_ref[:, pad:pad + seq, :] = act

    # -- folded depthwise*pointwise 5x5 conv as ONE long-K matmul over taps ---
    windows = jnp.concatenate(
        [pad_ref[:, ky:ky + seq, :] for ky in range(ksize)], axis=-1)    # (TB,S,KH*CD)
    conv = jnp.dot(windows.reshape(m, ksize * cd).astype(bf16), cw_ref[...],
                   preferred_element_type=f32)
    y = jnp.maximum(conv + cb_ref[...], 0.0)                             # (M, D)

    # --------------------------- transformer blocks --------------------------
    def to_heads(mat, off):
        # (M, 3D) lane-slice -> (H*TB, S, dh); batch index = h*TB + t.
        parts = [mat[:, off + h * dh: off + (h + 1) * dh].reshape(tb, seq, dh)
                 for h in range(heads)]
        return jnp.stack(parts, axis=0).reshape(heads * tb, seq, dh)

    for n in range(n_blocks):
        # fused QKV projection (1/sqrt(dh) pre-folded into Q weights/bias)
        qkv = jnp.dot(y.astype(bf16), wqkv_ref[n],
                      preferred_element_type=f32) + bqkv_ref[n]          # (M,3D)
        q_h = to_heads(qkv, 0)
        k_h = to_heads(qkv, dim)
        v_h = to_heads(qkv, 2 * dim)

        # attention batched over (head, batch-tile) in single dot_generals
        s = jax.lax.dot_general(q_h.astype(bf16), k_h.astype(bf16),
                                (((2,), (2,)), ((0,), (0,))),
                                preferred_element_type=f32)              # (H*TB,S,S)
        s = s - jnp.max(s, axis=-1, keepdims=True)
        p = jnp.exp(s)
        p = p * pl.reciprocal(jnp.sum(p, axis=-1, keepdims=True), approx=True)
        ctx = jax.lax.dot_general(p.astype(bf16), v_h.astype(bf16),
                                  (((2,), (1,)), ((0,), (0,))),
                                  preferred_element_type=f32)            # (H*TB,S,dh)

        # output projection WITHOUT an H-way lane concat: per-head (dh, D)
        # weight slabs batched over (head, tb), then reduced over heads.
        attn = jax.lax.dot_general(ctx.astype(bf16), wo_ref[n],
                                   (((2,), (1,)), ((0,), (0,))),
                                   preferred_element_type=f32)           # (H*TB,S,D)
        attn4 = attn.reshape(heads, tb, seq, dim)
        attn_sum = attn4[0]
        for h in range(1, heads):
            attn_sum = attn_sum + attn4[h]
        attn_sum = attn_sum.reshape(m, dim) + bo_ref[n]                  # (M, D)

        y = _layernorm(y + attn_sum, g1_ref[n], be1_ref[n])
        h1 = jnp.maximum(jnp.dot(y.astype(bf16), w1_ref[n],
                                 preferred_element_type=f32) + b1_ref[n], 0.0)
        h2 = jnp.dot(h1.astype(bf16), w2_ref[n],
                     preferred_element_type=f32) + b2_ref[n]
        y = _layernorm(y + h2, g2_ref[n], be2_ref[n])

    o_ref[...] = y.reshape(tb, seq, dim)


def log_mel_encoder(x, kp, tb=TB):
    bsz, n_ch, seq, dim = x.shape
    assert bsz % tb == 0, "batch must be divisible by the batch tile"
    cd = n_ch * dim
    # (B,C,S,D) -> (B,S,C*D): done once at the XLA level outside the kernel so
    # the in-kernel activation slab is channel-major and lane-dense.
    x_r = jnp.transpose(x, (0, 2, 1, 3)).reshape(bsz, seq, cd)

    kernel = functools.partial(
        fused_forward_kernel, tb=tb, n_ch=n_ch, seq=seq, dim=dim, ksize=KH,
        pad=PAD, heads=H, n_blocks=NUM_BLOCKS)

    def resident(a):
        # full array VMEM-resident; constant index_map -> no per-step re-DMA
        return pl.BlockSpec(a.shape, lambda b, _nd=a.ndim: (0,) * _nd)

    names = ["bn_scale", "bn_bias", "conv_w", "conv_b", "wqkv", "bqkv",
             "wo", "bo", "g1", "be1", "w1", "b1", "w2", "b2", "g2", "be2"]
    in_specs = [pl.BlockSpec((tb, seq, cd), lambda b: (b, 0, 0))]
    in_specs += [resident(kp[n]) for n in names]
    args = [x_r] + [kp[n] for n in names]

    return pl.pallas_call(
        kernel,
        out_shape=jax.ShapeDtypeStruct((bsz, seq, dim), jnp.float32),
        grid=(bsz // tb,),
        in_specs=in_specs,
        out_specs=pl.BlockSpec((tb, seq, dim), lambda b: (b, 0, 0)),
        scratch_shapes=[pltpu.VMEM((tb, seq + 2 * PAD, cd), jnp.float32)],
        compiler_params=pltpu.CompilerParams(
            dimension_semantics=("parallel",),
            vmem_limit_bytes=32 * 1024 * 1024),
    )(*args)


# --------------------------------------------------------------------------
# Parameter construction (PyTorch-convention raw params) and one-time
# kernel-side preparation (fold / transpose / stack / bf16 cast).
# --------------------------------------------------------------------------
def init_params(key):
    def nrm(k, shape, scale=0.1):
        return scale * jax.random.normal(k, shape, jnp.float32)

    keys = iter(jax.random.split(key, 64))
    gamma = 1.0 + nrm(next(keys), (C,))
    beta = nrm(next(keys), (C,))
    r_mean = nrm(next(keys), (C,))
    r_var = 1.0 + 0.1 * jax.random.uniform(next(keys), (C,), jnp.float32)
    bn_scale = gamma / jnp.sqrt(r_var + BN_EPS)
    bn_bias = beta - r_mean * bn_scale

    params = {
        "bn_scale": bn_scale, "bn_bias": bn_bias,
        "dw_w": nrm(next(keys), (E, KH, KW)), "dw_b": nrm(next(keys), (E,)),
        "pw_w": nrm(next(keys), (E,)), "pw_b": nrm(next(keys), (1,)),
        "blocks": [],
    }
    for _ in range(NUM_BLOCKS):
        blk = {
            "wq": nrm(next(keys), (D, D)), "bq": nrm(next(keys), (1, D)),
            "wk": nrm(next(keys), (D, D)), "bk": nrm(next(keys), (1, D)),
            "wv": nrm(next(keys), (D, D)), "bv": nrm(next(keys), (1, D)),
            "wo": nrm(next(keys), (D, D)), "bo": nrm(next(keys), (1, D)),
            "g1": 1.0 + nrm(next(keys), (1, D)), "be1": nrm(next(keys), (1, D)),
            "w1": nrm(next(keys), (FFN, D)), "b1": nrm(next(keys), (1, FFN)),
            "w2": nrm(next(keys), (D, FFN)), "b2": nrm(next(keys), (1, D)),
            "g2": 1.0 + nrm(next(keys), (1, D)), "be2": nrm(next(keys), (1, D)),
        }
        params["blocks"].append(blk)
    return params


def prepare_params(p, tb=TB):
    """Host-side one-time prep: fold pointwise into depthwise, build the banded
    long-K conv matrix, fuse/scale QKV, per-head wo slabs, bf16 matmul weights."""
    dh = D // H
    inv = 1.0 / math.sqrt(dh)
    f32, bf16 = jnp.float32, jnp.bfloat16

    # pointwise 1x1 folded into the depthwise taps (both linear, no activation
    # in between -> exact)
    w_comb = (p["pw_w"][:, None, None] * p["dw_w"]) \
        .reshape(C, EXPANSION, KH, KW).sum(axis=1)                   # (C,KH,KW)
    conv_b = p["pw_b"][0] + jnp.sum(p["pw_w"] * p["dw_b"])

    # banded weights for the single conv matmul:
    #   windows lane index = ky*(C*D) + c*D + d_in
    #   W[row, d_out] = w_comb[c, ky, d_in - d_out + PAD] if that tap exists
    d_in = jnp.arange(D)[:, None]
    d_out = jnp.arange(D)[None, :]
    tap = d_in - d_out + PAD
    valid = (tap >= 0) & (tap < KW)
    tap_c = jnp.clip(tap, 0, KW - 1)
    wband = jnp.where(valid[None, None], w_comb[:, :, tap_c], 0.0)   # (C,KH,D,D)
    conv_w = jnp.transpose(wband, (1, 0, 2, 3)).reshape(KH * C * D, D)

    def stack(fn, dtype):
        return jnp.stack([fn(b) for b in p["blocks"]], axis=0).astype(dtype)

    def wo_heads(b):
        # wo.T split per head into (dh, D) slabs, tiled over TB so the batch
        # index matches the kernel's (head-major, tb-minor) attention batch.
        wot = b["wo"].T.reshape(H, dh, D)                            # (H,dh,D)
        return jnp.repeat(wot, tb, axis=0)                           # (H*TB,dh,D)

    return {
        # BN folded to scale/bias, broadcast across the channel-major lane dim
        "bn_scale": jnp.repeat(p["bn_scale"], D).reshape(1, C * D),
        "bn_bias": jnp.repeat(p["bn_bias"], D).reshape(1, C * D),
        "conv_w": conv_w.astype(bf16),
        "conv_b": jnp.full((1, D), conv_b, f32),
        "wqkv": stack(lambda b: jnp.concatenate(
            [b["wq"].T * inv, b["wk"].T, b["wv"].T], axis=1), bf16),  # (N,D,3D)
        "bqkv": stack(lambda b: jnp.concatenate(
            [b["bq"] * inv, b["bk"], b["bv"]], axis=1), f32),         # (N,1,3D)
        "wo": stack(wo_heads, bf16),                                  # (N,H*TB,dh,D)
        "bo": stack(lambda b: b["bo"], f32),
        "g1": stack(lambda b: b["g1"], f32), "be1": stack(lambda b: b["be1"], f32),
        "w1": stack(lambda b: b["w1"].T, bf16), "b1": stack(lambda b: b["b1"], f32),
        "w2": stack(lambda b: b["w2"].T, bf16), "b2": stack(lambda b: b["b2"], f32),
        "g2": stack(lambda b: b["g2"], f32), "be2": stack(lambda b: b["be2"], f32),
    }


# --------------------------------------------------------------------------
# Pure-JAX f32 reference (numerical sanity check) on the raw parameters.
# --------------------------------------------------------------------------
def reference(x, params):
    y = jnp.maximum(x * params["bn_scale"][None, :, None, None]
                    + params["bn_bias"][None, :, None, None], 0.0)
    dw_w = params["dw_w"].reshape(E, 1, KH, KW)
    y = jax.lax.conv_general_dilated(
        y, dw_w, (1, 1), ((PAD, PAD), (PAD, PAD)),
        dimension_numbers=("NCHW", "OIHW", "NCHW"), feature_group_count=C)
    y = y + params["dw_b"][None, :, None, None]
    y = jax.lax.conv_general_dilated(
        y, params["pw_w"].reshape(1, E, 1, 1), (1, 1), "VALID",
        dimension_numbers=("NCHW", "OIHW", "NCHW"))
    y = jnp.maximum(y + params["pw_b"][None, :, None, None], 0.0)
    y = y[:, 0]                                            # (B, S, D)

    def ln(z, g, b):
        mu = jnp.mean(z, -1, keepdims=True)
        var = jnp.mean((z - mu) ** 2, -1, keepdims=True)
        return (z - mu) / jnp.sqrt(var + LN_EPS) * g + b

    dh = D // H
    for p in params["blocks"]:
        q = (y @ p["wq"].T + p["bq"]).reshape(B, S, H, dh)
        k = (y @ p["wk"].T + p["bk"]).reshape(B, S, H, dh)
        v = (y @ p["wv"].T + p["bv"]).reshape(B, S, H, dh)
        s = jnp.einsum("bqhd,bkhd->bhqk", q, k) / math.sqrt(dh)
        a = jax.nn.softmax(s, axis=-1)
        o = jnp.einsum("bhqk,bkhd->bqhd", a, v).reshape(B, S, D)
        o = o @ p["wo"].T + p["bo"]
        y1 = ln(y + o, p["g1"], p["be1"])
        h1 = jnp.maximum(y1 @ p["w1"].T + p["b1"], 0.0)
        h2 = h1 @ p["w2"].T + p["b2"]
        y = ln(y1 + h2, p["g2"], p["be2"])
    return y


if __name__ == "__main__":
    root = jax.random.PRNGKey(0)
    k_in, k_par = jax.random.split(root)
    x = 0.5 * jax.random.normal(k_in, (B, C, S, D), jnp.float32)
    params = init_params(k_par)
    kparams = prepare_params(params, TB)

    out = jax.block_until_ready(log_mel_encoder(x, kparams, TB))
    assert out.shape == (B, S, D)

    ref = reference(x, params)
    err = float(jnp.max(jnp.abs(out - ref)))
    # bf16 matmul operands (f32 accumulation) -> slightly looser tolerance
    if not bool(jnp.allclose(out, ref, atol=5e-2, rtol=5e-2)):
        raise AssertionError(
            f"Pallas output mismatch vs reference, max abs err {err:e}")
    print("KERNEL_OK")
</pallas_src>

<mosaic_0001>
module attributes {stable_mosaic.version = 11 : i64} {
  func.func @fused_forward_kernel(%arg0: i32, %arg1: memref<2x8x128xf32, #tpu.memory_space<vmem>>, %arg2: memref<1x128xf32, #tpu.memory_space<vmem>>, %arg3: memref<1x128xf32, #tpu.memory_space<vmem>>, %arg4: memref<640x32xbf16, #tpu.memory_space<vmem>>, %arg5: memref<1x32xf32, #tpu.memory_space<vmem>>, %arg6: memref<2x32x96xbf16, #tpu.memory_space<vmem>>, %arg7: memref<2x1x96xf32, #tpu.memory_space<vmem>>, %arg8: memref<2x8x8x32xbf16, #tpu.memory_space<vmem>>, %arg9: memref<2x1x32xf32, #tpu.memory_space<vmem>>, %arg10: memref<2x1x32xf32, #tpu.memory_space<vmem>>, %arg11: memref<2x1x32xf32, #tpu.memory_space<vmem>>, %arg12: memref<2x32x128xbf16, #tpu.memory_space<vmem>>, %arg13: memref<2x1x128xf32, #tpu.memory_space<vmem>>, %arg14: memref<2x128x32xbf16, #tpu.memory_space<vmem>>, %arg15: memref<2x1x32xf32, #tpu.memory_space<vmem>>, %arg16: memref<2x1x32xf32, #tpu.memory_space<vmem>>, %arg17: memref<2x1x32xf32, #tpu.memory_space<vmem>>, %arg18: memref<2x8x32xf32, #tpu.memory_space<vmem>>, %arg19: memref<2x12x128xf32, #tpu.memory_space<vmem>>) attributes {dimension_semantics = [#tpu.dimension_semantics<parallel>], iteration_bounds = array<i64: 2>, scalar_prefetch = 0 : i64, scratch_operands = 1 : i64, tpu.core_type = #tpu.core_type<tc>, window_params = [{transform_indices = @transform_0, window_bounds = array<i64: 2, 8, 128>}, {pipeline_mode = #tpu.pipeline_mode<synchronous>, transform_indices = @transform_1, window_bounds = array<i64: 1, 128>}, {pipeline_mode = #tpu.pipeline_mode<synchronous>, transform_indices = @transform_2, window_bounds = array<i64: 1, 128>}, {pipeline_mode = #tpu.pipeline_mode<synchronous>, transform_indices = @transform_3, window_bounds = array<i64: 640, 32>}, {pipeline_mode = #tpu.pipeline_mode<synchronous>, transform_indices = @transform_4, window_bounds = array<i64: 1, 32>}, {pipeline_mode = #tpu.pipeline_mode<synchronous>, transform_indices = @transform_5, window_bounds = array<i64: 2, 32, 96>}, {pipeline_mode = #tpu.pipeline_mode<synchronous>, transform_indices = @transform_6, window_bounds = array<i64: 2, 1, 96>}, {pipeline_mode = #tpu.pipeline_mode<synchronous>, transform_indices = @transform_7, window_bounds = array<i64: 2, 8, 8, 32>}, {pipeline_mode = #tpu.pipeline_mode<synchronous>, transform_indices = @transform_8, window_bounds = array<i64: 2, 1, 32>}, {pipeline_mode = #tpu.pipeline_mode<synchronous>, transform_indices = @transform_9, window_bounds = array<i64: 2, 1, 32>}, {pipeline_mode = #tpu.pipeline_mode<synchronous>, transform_indices = @transform_10, window_bounds = array<i64: 2, 1, 32>}, {pipeline_mode = #tpu.pipeline_mode<synchronous>, transform_indices = @transform_11, window_bounds = array<i64: 2, 32, 128>}, {pipeline_mode = #tpu.pipeline_mode<synchronous>, transform_indices = @transform_12, window_bounds = array<i64: 2, 1, 128>}, {pipeline_mode = #tpu.pipeline_mode<synchronous>, transform_indices = @transform_13, window_bounds = array<i64: 2, 128, 32>}, {pipeline_mode = #tpu.pipeline_mode<synchronous>, transform_indices = @transform_14, window_bounds = array<i64: 2, 1, 32>}, {pipeline_mode = #tpu.pipeline_mode<synchronous>, transform_indices = @transform_15, window_bounds = array<i64: 2, 1, 32>}, {pipeline_mode = #tpu.pipeline_mode<synchronous>, transform_indices = @transform_16, window_bounds = array<i64: 2, 1, 32>}, {transform_indices = @transform_17, window_bounds = array<i64: 2, 8, 32>}]} {
    %c0 = arith.constant 0 : index
    %c0_0 = arith.constant 0 : index
    %c0_1 = arith.constant 0 : index
    %0 = vector.load %arg1[%c0, %c0_0, %c0_1] : memref<2x8x128xf32, #tpu.memory_space<vmem>>, vector<2x8x128xf32>
    %c0_2 = arith.constant 0 : index
    %c0_3 = arith.constant 0 : index
    %1 = vector.load %arg2[%c0_2, %c0_3] : memref<1x128xf32, #tpu.memory_space<vmem>>, vector<1x128xf32>
    %2 = vector.shape_cast %1 : vector<1x128xf32> to vector<1x1x128xf32>
    %3 = vector.broadcast %2 : vector<1x1x128xf32> to vector<2x8x128xf32>
    %4 = arith.mulf %0, %3 : vector<2x8x128xf32>
    %c0_4 = arith.constant 0 : index
    %c0_5 = arith.constant 0 : index
    %5 = vector.load %arg3[%c0_4, %c0_5] : memref<1x128xf32, #tpu.memory_space<vmem>>, vector<1x128xf32>
    %6 = vector.shape_cast %5 : vector<1x128xf32> to vector<1x1x128xf32>
    %7 = vector.broadcast %6 : vector<1x1x128xf32> to vector<2x8x128xf32>
    %8 = arith.addf %4, %7 : vector<2x8x128xf32>
    %cst = arith.constant 0.000000e+00 : f32
    %9 = vector.broadcast %cst : f32 to vector<2x8x128xf32>
    %10 = arith.maximumf %8, %9 : vector<2x8x128xf32>
    %cst_6 = arith.constant 0.000000e+00 : f32
    %11 = vector.broadcast %cst_6 : f32 to vector<2x12x128xf32>
    %c0_7 = arith.constant 0 : index
    %c0_8 = arith.constant 0 : index
    %c0_9 = arith.constant 0 : index
    %12 = vector.load %arg19[%c0_7, %c0_8, %c0_9] : memref<2x12x128xf32, #tpu.memory_space<vmem>>, vector<2x12x128xf32>
    tpu.vector_store %arg19[%c0_7, %c0_8, %c0_9], %11 {strides = array<i32>} : memref<2x12x128xf32, #tpu.memory_space<vmem>>, vector<2x12x128xf32>,
    %c0_10 = arith.constant 0 : index
    %c2 = arith.constant 2 : index
    %c0_11 = arith.constant 0 : index
    %13 = vector.load %arg19[%c0_10, %c2, %c0_11] : memref<2x12x128xf32, #tpu.memory_space<vmem>>, vector<2x8x128xf32>
    tpu.vector_store %arg19[%c0_10, %c2, %c0_11], %10 {strides = array<i32>} : memref<2x12x128xf32, #tpu.memory_space<vmem>>, vector<2x8x128xf32>,
    %c0_12 = arith.constant 0 : index
    %c0_13 = arith.constant 0 : index
    %c0_14 = arith.constant 0 : index
    %14 = vector.load %arg19[%c0_12, %c0_13, %c0_14] : memref<2x12x128xf32, #tpu.memory_space<vmem>>, vector<2x8x128xf32>
    %c0_15 = arith.constant 0 : index
    %c1 = arith.constant 1 : index
    %c0_16 = arith.constant 0 : index
    %15 = vector.load %arg19[%c0_15, %c1, %c0_16] : memref<2x12x128xf32, #tpu.memory_space<vmem>>, vector<2x8x128xf32>
    %c0_17 = arith.constant 0 : index
    %c2_18 = arith.constant 2 : index
    %c0_19 = arith.constant 0 : index
    %16 = vector.load %arg19[%c0_17, %c2_18, %c0_19] : memref<2x12x128xf32, #tpu.memory_space<vmem>>, vector<2x8x128xf32>
    %c0_20 = arith.constant 0 : index
    %c3 = arith.constant 3 : index
    %c0_21 = arith.constant 0 : index
    %17 = vector.load %arg19[%c0_20, %c3, %c0_21] : memref<2x12x128xf32, #tpu.memory_space<vmem>>, vector<2x8x128xf32>
    %c0_22 = arith.constant 0 : index
    %c4 = arith.constant 4 : index
    %c0_23 = arith.constant 0 : index
    %18 = vector.load %arg19[%c0_22, %c4, %c0_23] : memref<2x12x128xf32, #tpu.memory_space<vmem>>, vector<2x8x128xf32>
    %19 = tpu.concatenate %14, %15, %16, %17, %18 in 2 : vector<2x8x128xf32>, vector<2x8x128xf32>, vector<2x8x128xf32>, vector<2x8x128xf32>, vector<2x8x128xf32> -> vector<2x8x640xf32>
    %20 = vector.shape_cast %19 : vector<2x8x640xf32> to vector<16x640xf32>
    %21 = arith.truncf %20 : vector<16x640xf32> to vector<16x640xbf16>
    %c0_24 = arith.constant 0 : index
    %c0_25 = arith.constant 0 : index
    %22 = vector.load %arg4[%c0_24, %c0_25] : memref<640x32xbf16, #tpu.memory_space<vmem>>, vector<640x32xbf16>
    %cst_26 = arith.constant dense<0.000000e+00> : vector<16x32xf32>
    %23 = tpu.matmul %21, %22, %cst_26 {dimension_numbers = #tpu.dot_dimension_numbers<[1], [0], [0], [1], [0, 0, 1, 1], [], []>} : vector<16x640xbf16>, vector<640x32xbf16>, vector<16x32xf32> -> vector<16x32xf32>
    %c0_27 = arith.constant 0 : index
    %c0_28 = arith.constant 0 : index
    %24 = vector.load %arg5[%c0_27, %c0_28] : memref<1x32xf32, #tpu.memory_space<vmem>>, vector<1x32xf32>
    %25 = vector.broadcast %24 : vector<1x32xf32> to vector<16x32xf32>
    %26 = arith.addf %23, %25 : vector<16x32xf32>
    %cst_29 = arith.constant 0.000000e+00 : f32
    %27 = vector.broadcast %cst_29 : f32 to vector<16x32xf32>
    %28 = arith.maximumf %26, %27 : vector<16x32xf32>
    %29 = arith.truncf %28 : vector<16x32xf32> to vector<16x32xbf16>
    %c0_30 = arith.constant 0 : index
    %c0_31 = arith.constant 0 : index
    %c0_32 = arith.constant 0 : index
    %30 = vector.load %arg6[%c0_30, %c0_31, %c0_32] : memref<2x32x96xbf16, #tpu.memory_space<vmem>>, vector<1x32x96xbf16>
    %31 = vector.shape_cast %30 : vector<1x32x96xbf16> to vector<32x96xbf16>
    %cst_33 = arith.constant dense<0.000000e+00> : vector<16x96xf32>
    %32 = tpu.matmul %29, %31, %cst_33 {dimension_numbers = #tpu.dot_dimension_numbers<[1], [0], [0], [1], [0, 0, 1, 1], [], []>} : vector<16x32xbf16>, vector<32x96xbf16>, vector<16x96xf32> -> vector<16x96xf32>
    %c0_34 = arith.constant 0 : index
    %c0_35 = arith.constant 0 : index
    %c0_36 = arith.constant 0 : index
    %33 = vector.load %arg7[%c0_34, %c0_35, %c0_36] : memref<2x1x96xf32, #tpu.memory_space<vmem>>, vector<1x1x96xf32>
    %34 = vector.shape_cast %33 : vector<1x1x96xf32> to vector<1x96xf32>
    %35 = vector.broadcast %34 : vector<1x96xf32> to vector<16x96xf32>
    %36 = arith.addf %32, %35 : vector<16x96xf32>
    %37 = vector.extract_strided_slice %36 {offsets = [0, 0], sizes = [16, 8], strides = [1, 1]} : vector<16x96xf32> to vector<16x8xf32>
    %38 = vector.shape_cast %37 : vector<16x8xf32> to vector<2x8x8xf32>
    %39 = vector.extract_strided_slice %36 {offsets = [0, 8], sizes = [16, 8], strides = [1, 1]} : vector<16x96xf32> to vector<16x8xf32>
    %40 = vector.shape_cast %39 : vector<16x8xf32> to vector<2x8x8xf32>
    %41 = vector.extract_strided_slice %36 {offsets = [0, 16], sizes = [16, 8], strides = [1, 1]} : vector<16x96xf32> to vector<16x8xf32>
    %42 = vector.shape_cast %41 : vector<16x8xf32> to vector<2x8x8xf32>
    %43 = vector.extract_strided_slice %36 {offsets = [0, 24], sizes = [16, 8], strides = [1, 1]} : vector<16x96xf32> to vector<16x8xf32>
    %44 = vector.shape_cast %43 : vector<16x8xf32> to vector<2x8x8xf32>
    %45 = vector.shape_cast %38 : vector<2x8x8xf32> to vector<1x2x8x8xf32>
    %46 = vector.shape_cast %40 : vector<2x8x8xf32> to vector<1x2x8x8xf32>
    %47 = vector.shape_cast %42 : vector<2x8x8xf32> to vector<1x2x8x8xf32>
    %48 = vector.shape_cast %44 : vector<2x8x8xf32> to vector<1x2x8x8xf32>
    %49 = tpu.concatenate %45, %46, %47, %48 in 0 : vector<1x2x8x8xf32>, vector<1x2x8x8xf32>, vector<1x2x8x8xf32>, vector<1x2x8x8xf32> -> vector<4x2x8x8xf32>
    %50 = vector.shape_cast %49 : vector<4x2x8x8xf32> to vector<8x8x8xf32>
    %51 = vector.extract_strided_slice %36 {offsets = [0, 32], sizes = [16, 8], strides = [1, 1]} : vector<16x96xf32> to vector<16x8xf32>
    %52 = vector.shape_cast %51 : vector<16x8xf32> to vector<2x8x8xf32>
    %53 = vector.extract_strided_slice %36 {offsets = [0, 40], sizes = [16, 8], strides = [1, 1]} : vector<16x96xf32> to vector<16x8xf32>
    %54 = vector.shape_cast %53 : vector<16x8xf32> to vector<2x8x8xf32>
    %55 = vector.extract_strided_slice %36 {offsets = [0, 48], sizes = [16, 8], strides = [1, 1]} : vector<16x96xf32> to vector<16x8xf32>
    %56 = vector.shape_cast %55 : vector<16x8xf32> to vector<2x8x8xf32>
    %57 = vector.extract_strided_slice %36 {offsets = [0, 56], sizes = [16, 8], strides = [1, 1]} : vector<16x96xf32> to vector<16x8xf32>
    %58 = vector.shape_cast %57 : vector<16x8xf32> to vector<2x8x8xf32>
    %59 = vector.shape_cast %52 : vector<2x8x8xf32> to vector<1x2x8x8xf32>
    %60 = vector.shape_cast %54 : vector<2x8x8xf32> to vector<1x2x8x8xf32>
    %61 = vector.shape_cast %56 : vector<2x8x8xf32> to vector<1x2x8x8xf32>
    %62 = vector.shape_cast %58 : vector<2x8x8xf32> to vector<1x2x8x8xf32>
    %63 = tpu.concatenate %59, %60, %61, %62 in 0 : vector<1x2x8x8xf32>, vector<1x2x8x8xf32>, vector<1x2x8x8xf32>, vector<1x2x8x8xf32> -> vector<4x2x8x8xf32>
    %64 = vector.shape_cast %63 : vector<4x2x8x8xf32> to vector<8x8x8xf32>
    %65 = vector.extract_strided_slice %36 {offsets = [0, 64], sizes = [16, 8], strides = [1, 1]} : vector<16x96xf32> to vector<16x8xf32>
    %66 = vector.shape_cast %65 : vector<16x8xf32> to vector<2x8x8xf32>
    %67 = vector.extract_strided_slice %36 {offsets = [0, 72], sizes = [16, 8], strides = [1, 1]} : vector<16x96xf32> to vector<16x8xf32>
    %68 = vector.shape_cast %67 : vector<16x8xf32> to vector<2x8x8xf32>
    %69 = vector.extract_strided_slice %36 {offsets = [0, 80], sizes = [16, 8], strides = [1, 1]} : vector<16x96xf32> to vector<16x8xf32>
    %70 = vector.shape_cast %69 : vector<16x8xf32> to vector<2x8x8xf32>
    %71 = vector.extract_strided_slice %36 {offsets = [0, 88], sizes = [16, 8], strides = [1, 1]} : vector<16x96xf32> to vector<16x8xf32>
    %72 = vector.shape_cast %71 : vector<16x8xf32> to vector<2x8x8xf32>
    %73 = vector.shape_cast %66 : vector<2x8x8xf32> to vector<1x2x8x8xf32>
    %74 = vector.shape_cast %68 : vector<2x8x8xf32> to vector<1x2x8x8xf32>
    %75 = vector.shape_cast %70 : vector<2x8x8xf32> to vector<1x2x8x8xf32>
    %76 = vector.shape_cast %72 : vector<2x8x8xf32> to vector<1x2x8x8xf32>
    %77 = tpu.concatenate %73, %74, %75, %76 in 0 : vector<1x2x8x8xf32>, vector<1x2x8x8xf32>, vector<1x2x8x8xf32>, vector<1x2x8x8xf32> -> vector<4x2x8x8xf32>
    %78 = vector.shape_cast %77 : vector<4x2x8x8xf32> to vector<8x8x8xf32>
    %79 = arith.truncf %50 : vector<8x8x8xf32> to vector<8x8x8xbf16>
    %80 = arith.truncf %64 : vector<8x8x8xf32> to vector<8x8x8xbf16>
    %cst_37 = arith.constant dense<0.000000e+00> : vector<8x8x8xf32>
    %81 = tpu.matmul %79, %80, %cst_37 {dimension_numbers = #tpu.dot_dimension_numbers<[2], [2], [1], [1], [0, 0, 0, 1, 1, 1], [0], [0]>} : vector<8x8x8xbf16>, vector<8x8x8xbf16>, vector<8x8x8xf32> -> vector<8x8x8xf32>
    %cst_38 = arith.constant dense<0xFF800000> : vector<8x8xf32>
    %82 = vector.multi_reduction <maximumf>, %81, %cst_38 [2] : vector<8x8x8xf32> to vector<8x8xf32>
    %83 = vector.shape_cast %82 : vector<8x8xf32> to vector<8x8x1xf32>
    %84 = vector.broadcast %83 : vector<8x8x1xf32> to vector<8x8x8xf32>
    %85 = arith.subf %81, %84 : vector<8x8x8xf32>
    %86 = math.exp %85 : vector<8x8x8xf32>
    %cst_39 = arith.constant dense<0.000000e+00> : vector<8x8xf32>
    %87 = vector.multi_reduction <add>, %86, %cst_39 [2] : vector<8x8x8xf32> to vector<8x8xf32>
    %88 = vector.shape_cast %87 : vector<8x8xf32> to vector<8x8x1xf32>
    %89 = tpu.reciprocal %88 {approx = true} : vector<8x8x1xf32> -> vector<8x8x1xf32>
    %90 = vector.broadcast %89 : vector<8x8x1xf32> to vector<8x8x8xf32>
    %91 = arith.mulf %86, %90 : vector<8x8x8xf32>
    %92 = arith.truncf %91 : vector<8x8x8xf32> to vector<8x8x8xbf16>
    %93 = arith.truncf %78 : vector<8x8x8xf32> to vector<8x8x8xbf16>
    %cst_40 = arith.constant dense<0.000000e+00> : vector<8x8x8xf32>
    %94 = tpu.matmul %92, %93, %cst_40 {dimension_numbers = #tpu.dot_dimension_numbers<[2], [1], [1], [2], [0, 0, 0, 1, 1, 2], [0], [0]>} : vector<8x8x8xbf16>, vector<8x8x8xbf16>, vector<8x8x8xf32> -> vector<8x8x8xf32>
    %95 = arith.truncf %94 : vector<8x8x8xf32> to vector<8x8x8xbf16>
    %c0_41 = arith.constant 0 : index
    %c0_42 = arith.constant 0 : index
    %c0_43 = arith.constant 0 : index
    %c0_44 = arith.constant 0 : index
    %96 = vector.load %arg8[%c0_41, %c0_42, %c0_43, %c0_44] : memref<2x8x8x32xbf16, #tpu.memory_space<vmem>>, vector<1x8x8x32xbf16>
    %97 = vector.shape_cast %96 : vector<1x8x8x32xbf16> to vector<8x8x32xbf16>
    %cst_45 = arith.constant dense<0.000000e+00> : vector<8x8x32xf32>
    %98 = tpu.matmul %95, %97, %cst_45 {dimension_numbers = #tpu.dot_dimension_numbers<[2], [1], [1], [2], [0, 0, 0, 1, 1, 2], [0], [0]>} : vector<8x8x8xbf16>, vector<8x8x32xbf16>, vector<8x8x32xf32> -> vector<8x8x32xf32>
    %99 = vector.shape_cast %98 : vector<8x8x32xf32> to vector<4x2x8x32xf32>
    %100 = vector.extract_strided_slice %99 {offsets = [0, 0, 0, 0], sizes = [1, 2, 8, 32], strides = [1, 1, 1, 1]} : vector<4x2x8x32xf32> to vector<1x2x8x32xf32>
    %101 = vector.shape_cast %100 : vector<1x2x8x32xf32> to vector<2x8x32xf32>
    %102 = vector.extract_strided_slice %99 {offsets = [1, 0, 0, 0], sizes = [1, 2, 8, 32], strides = [1, 1, 1, 1]} : vector<4x2x8x32xf32> to vector<1x2x8x32xf32>
    %103 = vector.shape_cast %102 : vector<1x2x8x32xf32> to vector<2x8x32xf32>
    %104 = arith.addf %101, %103 : vector<2x8x32xf32>
    %105 = vector.extract_strided_slice %99 {offsets = [2, 0, 0, 0], sizes = [1, 2, 8, 32], strides = [1, 1, 1, 1]} : vector<4x2x8x32xf32> to vector<1x2x8x32xf32>
    %106 = vector.shape_cast %105 : vector<1x2x8x32xf32> to vector<2x8x32xf32>
    %107 = arith.addf %104, %106 : vector<2x8x32xf32>
    %108 = vector.extract_strided_slice %99 {offsets = [3, 0, 0, 0], sizes = [1, 2, 8, 32], strides = [1, 1, 1, 1]} : vector<4x2x8x32xf32> to vector<1x2x8x32xf32>
    %109 = vector.shape_cast %108 : vector<1x2x8x32xf32> to vector<2x8x32xf32>
    %110 = arith.addf %107, %109 : vector<2x8x32xf32>
    %111 = vector.shape_cast %110 : vector<2x8x32xf32> to vector<16x32xf32>
    %c0_46 = arith.constant 0 : index
    %c0_47 = arith.constant 0 : index
    %c0_48 = arith.constant 0 : index
    %112 = vector.load %arg9[%c0_46, %c0_47, %c0_48] : memref<2x1x32xf32, #tpu.memory_space<vmem>>, vector<1x1x32xf32>
    %113 = vector.shape_cast %112 : vector<1x1x32xf32> to vector<1x32xf32>
    %114 = vector.broadcast %113 : vector<1x32xf32> to vector<16x32xf32>
    %115 = arith.addf %111, %114 : vector<16x32xf32>
    %116 = arith.addf %28, %115 : vector<16x32xf32>
    %c0_49 = arith.constant 0 : index
    %c0_50 = arith.constant 0 : index
    %c0_51 = arith.constant 0 : index
    %117 = vector.load %arg10[%c0_49, %c0_50, %c0_51] : memref<2x1x32xf32, #tpu.memory_space<vmem>>, vector<1x1x32xf32>
    %118 = vector.shape_cast %117 : vector<1x1x32xf32> to vector<1x32xf32>
    %c0_52 = arith.constant 0 : index
    %c0_53 = arith.constant 0 : index
    %c0_54 = arith.constant 0 : index
    %119 = vector.load %arg11[%c0_52, %c0_53, %c0_54] : memref<2x1x32xf32, #tpu.memory_space<vmem>>, vector<1x1x32xf32>
    %120 = vector.shape_cast %119 : vector<1x1x32xf32> to vector<1x32xf32>
    %cst_55 = arith.constant dense<0.000000e+00> : vector<16xf32>
    %121 = vector.multi_reduction <add>, %116, %cst_55 [1] : vector<16x32xf32> to vector<16xf32>
    %122 = vector.shape_cast %121 : vector<16xf32> to vector<16x1xf32>
    %cst_56 = arith.constant 3.200000e+01 : f32
    %123 = vector.broadcast %cst_56 : f32 to vector<16x1xf32>
    %124 = arith.divf %122, %123 : vector<16x1xf32>
    %125 = vector.broadcast %124 : vector<16x1xf32> to vector<16x32xf32>
    %126 = arith.subf %116, %125 : vector<16x32xf32>
    %127 = arith.mulf %126, %126 : vector<16x32xf32>
    %cst_57 = arith.constant dense<0.000000e+00> : vector<16xf32>
    %128 = vector.multi_reduction <add>, %127, %cst_57 [1] : vector<16x32xf32> to vector<16xf32>
    %129 = vector.shape_cast %128 : vector<16xf32> to vector<16x1xf32>
    %cst_58 = arith.constant 3.200000e+01 : f32
    %130 = vector.broadcast %cst_58 : f32 to vector<16x1xf32>
    %131 = arith.divf %129, %130 : vector<16x1xf32>
    %132 = vector.broadcast %124 : vector<16x1xf32> to vector<16x32xf32>
    %133 = arith.subf %116, %132 : vector<16x32xf32>
    %cst_59 = arith.constant 9.99999974E-6 : f32
    %134 = vector.broadcast %cst_59 : f32 to vector<16x1xf32>
    %135 = arith.addf %131, %134 : vector<16x1xf32>
    %136 = math.rsqrt %135 : vector<16x1xf32>
    %137 = vector.broadcast %136 : vector<16x1xf32> to vector<16x32xf32>
    %138 = arith.mulf %133, %137 : vector<16x32xf32>
    %139 = vector.broadcast %118 : vector<1x32xf32> to vector<16x32xf32>
    %140 = arith.mulf %138, %139 : vector<16x32xf32>
    %141 = vector.broadcast %120 : vector<1x32xf32> to vector<16x32xf32>
    %142 = arith.addf %140, %141 : vector<16x32xf32>
    %143 = arith.truncf %142 : vector<16x32xf32> to vector<16x32xbf16>
    %c0_60 = arith.constant 0 : index
    %c0_61 = arith.constant 0 : index
    %c0_62 = arith.constant 0 : index
    %144 = vector.load %arg12[%c0_60, %c0_61, %c0_62] : memref<2x32x128xbf16, #tpu.memory_space<vmem>>, vector<1x32x128xbf16>
    %145 = vector.shape_cast %144 : vector<1x32x128xbf16> to vector<32x128xbf16>
    %cst_63 = arith.constant dense<0.000000e+00> : vector<16x128xf32>
    %146 = tpu.matmul %143, %145, %cst_63 {dimension_numbers = #tpu.dot_dimension_numbers<[1], [0], [0], [1], [0, 0, 1, 1], [], []>} : vector<16x32xbf16>, vector<32x128xbf16>, vector<16x128xf32> -> vector<16x128xf32>
    %c0_64 = arith.constant 0 : index
    %c0_65 = arith.constant 0 : index
    %c0_66 = arith.constant 0 : index
    %147 = vector.load %arg13[%c0_64, %c0_65, %c0_66] : memref<2x1x128xf32, #tpu.memory_space<vmem>>, vector<1x1x128xf32>
    %148 = vector.shape_cast %147 : vector<1x1x128xf32> to vector<1x128xf32>
    %149 = vector.broadcast %148 : vector<1x128xf32> to vector<16x128xf32>
    %150 = arith.addf %146, %149 : vector<16x128xf32>
    %cst_67 = arith.constant 0.000000e+00 : f32
    %151 = vector.broadcast %cst_67 : f32 to vector<16x128xf32>
    %152 = arith.maximumf %150, %151 : vector<16x128xf32>
    %153 = arith.truncf %152 : vector<16x128xf32> to vector<16x128xbf16>
    %c0_68 = arith.constant 0 : index
    %c0_69 = arith.constant 0 : index
    %c0_70 = arith.constant 0 : index
    %154 = vector.load %arg14[%c0_68, %c0_69, %c0_70] : memref<2x128x32xbf16, #tpu.memory_space<vmem>>, vector<1x128x32xbf16>
    %155 = vector.shape_cast %154 : vector<1x128x32xbf16> to vector<128x32xbf16>
    %cst_71 = arith.constant dense<0.000000e+00> : vector<16x32xf32>
    %156 = tpu.matmul %153, %155, %cst_71 {dimension_numbers = #tpu.dot_dimension_numbers<[1], [0], [0], [1], [0, 0, 1, 1], [], []>} : vector<16x128xbf16>, vector<128x32xbf16>, vector<16x32xf32> -> vector<16x32xf32>
    %c0_72 = arith.constant 0 : index
    %c0_73 = arith.constant 0 : index
    %c0_74 = arith.constant 0 : index
    %157 = vector.load %arg15[%c0_72, %c0_73, %c0_74] : memref<2x1x32xf32, #tpu.memory_space<vmem>>, vector<1x1x32xf32>
    %158 = vector.shape_cast %157 : vector<1x1x32xf32> to vector<1x32xf32>
    %159 = vector.broadcast %158 : vector<1x32xf32> to vector<16x32xf32>
    %160 = arith.addf %156, %159 : vector<16x32xf32>
    %161 = arith.addf %142, %160 : vector<16x32xf32>
    %c0_75 = arith.constant 0 : index
    %c0_76 = arith.constant 0 : index
    %c0_77 = arith.constant 0 : index
    %162 = vector.load %arg16[%c0_75, %c0_76, %c0_77] : memref<2x1x32xf32, #tpu.memory_space<vmem>>, vector<1x1x32xf32>
    %163 = vector.shape_cast %162 : vector<1x1x32xf32> to vector<1x32xf32>
    %c0_78 = arith.constant 0 : index
    %c0_79 = arith.constant 0 : index
    %c0_80 = arith.constant 0 : index
    %164 = vector.load %arg17[%c0_78, %c0_79, %c0_80] : memref<2x1x32xf32, #tpu.memory_space<vmem>>, vector<1x1x32xf32>
    %165 = vector.shape_cast %164 : vector<1x1x32xf32> to vector<1x32xf32>
    %cst_81 = arith.constant dense<0.000000e+00> : vector<16xf32>
    %166 = vector.multi_reduction <add>, %161, %cst_81 [1] : vector<16x32xf32> to vector<16xf32>
    %167 = vector.shape_cast %166 : vector<16xf32> to vector<16x1xf32>
    %cst_82 = arith.constant 3.200000e+01 : f32
    %168 = vector.broadcast %cst_82 : f32 to vector<16x1xf32>
    %169 = arith.divf %167, %168 : vector<16x1xf32>
    %170 = vector.broadcast %169 : vector<16x1xf32> to vector<16x32xf32>
    %171 = arith.subf %161, %170 : vector<16x32xf32>
    %172 = arith.mulf %171, %171 : vector<16x32xf32>
    %cst_83 = arith.constant dense<0.000000e+00> : vector<16xf32>
    %173 = vector.multi_reduction <add>, %172, %cst_83 [1] : vector<16x32xf32> to vector<16xf32>
    %174 = vector.shape_cast %173 : vector<16xf32> to vector<16x1xf32>
    %cst_84 = arith.constant 3.200000e+01 : f32
    %175 = vector.broadcast %cst_84 : f32 to vector<16x1xf32>
    %176 = arith.divf %174, %175 : vector<16x1xf32>
    %177 = vector.broadcast %169 : vector<16x1xf32> to vector<16x32xf32>
    %178 = arith.subf %161, %177 : vector<16x32xf32>
    %cst_85 = arith.constant 9.99999974E-6 : f32
    %179 = vector.broadcast %cst_85 : f32 to vector<16x1xf32>
    %180 = arith.addf %176, %179 : vector<16x1xf32>
    %181 = math.rsqrt %180 : vector<16x1xf32>
    %182 = vector.broadcast %181 : vector<16x1xf32> to vector<16x32xf32>
    %183 = arith.mulf %178, %182 : vector<16x32xf32>
    %184 = vector.broadcast %163 : vector<1x32xf32> to vector<16x32xf32>
    %185 = arith.mulf %183, %184 : vector<16x32xf32>
    %186 = vector.broadcast %165 : vector<1x32xf32> to vector<16x32xf32>
    %187 = arith.addf %185, %186 : vector<16x32xf32>
    %188 = arith.truncf %187 : vector<16x32xf32> to vector<16x32xbf16>
    %c1_86 = arith.constant 1 : index
    %c0_87 = arith.constant 0 : index
    %c0_88 = arith.constant 0 : index
    %189 = vector.load %arg6[%c1_86, %c0_87, %c0_88] : memref<2x32x96xbf16, #tpu.memory_space<vmem>>, vector<1x32x96xbf16>
    %190 = vector.shape_cast %189 : vector<1x32x96xbf16> to vector<32x96xbf16>
    %cst_89 = arith.constant dense<0.000000e+00> : vector<16x96xf32>
    %191 = tpu.matmul %188, %190, %cst_89 {dimension_numbers = #tpu.dot_dimension_numbers<[1], [0], [0], [1], [0, 0, 1, 1], [], []>} : vector<16x32xbf16>, vector<32x96xbf16>, vector<16x96xf32> -> vector<16x96xf32>
    %c1_90 = arith.constant 1 : index
    %c0_91 = arith.constant 0 : index
    %c0_92 = arith.constant 0 : index
    %192 = vector.load %arg7[%c1_90, %c0_91, %c0_92] : memref<2x1x96xf32, #tpu.memory_space<vmem>>, vector<1x1x96xf32>
    %193 = vector.shape_cast %192 : vector<1x1x96xf32> to vector<1x96xf32>
    %194 = vector.broadcast %193 : vector<1x96xf32> to vector<16x96xf32>
    %195 = arith.addf %191, %194 : vector<16x96xf32>
    %196 = vector.extract_strided_slice %195 {offsets = [0, 0], sizes = [16, 8], strides = [1, 1]} : vector<16x96xf32> to vector<16x8xf32>
    %197 = vector.shape_cast %196 : vector<16x8xf32> to vector<2x8x8xf32>
    %198 = vector.extract_strided_slice %195 {offsets = [0, 8], sizes = [16, 8], strides = [1, 1]} : vector<16x96xf32> to vector<16x8xf32>
    %199 = vector.shape_cast %198 : vector<16x8xf32> to vector<2x8x8xf32>
    %200 = vector.extract_strided_slice %195 {offsets = [0, 16], sizes = [16, 8], strides = [1, 1]} : vector<16x96xf32> to vector<16x8xf32>
    %201 = vector.shape_cast %200 : vector<16x8xf32> to vector<2x8x8xf32>
    %202 = vector.extract_strided_slice %195 {offsets = [0, 24], sizes = [16, 8], strides = [1, 1]} : vector<16x96xf32> to vector<16x8xf32>
    %203 = vector.shape_cast %202 : vector<16x8xf32> to vector<2x8x8xf32>
    %204 = vector.shape_cast %197 : vector<2x8x8xf32> to vector<1x2x8x8xf32>
    %205 = vector.shape_cast %199 : vector<2x8x8xf32> to vector<1x2x8x8xf32>
    %206 = vector.shape_cast %201 : vector<2x8x8xf32> to vector<1x2x8x8xf32>
    %207 = vector.shape_cast %203 : vector<2x8x8xf32> to vector<1x2x8x8xf32>
    %208 = tpu.concatenate %204, %205, %206, %207 in 0 : vector<1x2x8x8xf32>, vector<1x2x8x8xf32>, vector<1x2x8x8xf32>, vector<1x2x8x8xf32> -> vector<4x2x8x8xf32>
    %209 = vector.shape_cast %208 : vector<4x2x8x8xf32> to vector<8x8x8xf32>
    %210 = vector.extract_strided_slice %195 {offsets = [0, 32], sizes = [16, 8], strides = [1, 1]} : vector<16x96xf32> to vector<16x8xf32>
    %211 = vector.shape_cast %210 : vector<16x8xf32> to vector<2x8x8xf32>
    %212 = vector.extract_strided_slice %195 {offsets = [0, 40], sizes = [16, 8], strides = [1, 1]} : vector<16x96xf32> to vector<16x8xf32>
    %213 = vector.shape_cast %212 : vector<16x8xf32> to vector<2x8x8xf32>
    %214 = vector.extract_strided_slice %195 {offsets = [0, 48], sizes = [16, 8], strides = [1, 1]} : vector<16x96xf32> to vector<16x8xf32>
    %215 = vector.shape_cast %214 : vector<16x8xf32> to vector<2x8x8xf32>
    %216 = vector.extract_strided_slice %195 {offsets = [0, 56], sizes = [16, 8], strides = [1, 1]} : vector<16x96xf32> to vector<16x8xf32>
    %217 = vector.shape_cast %216 : vector<16x8xf32> to vector<2x8x8xf32>
    %218 = vector.shape_cast %211 : vector<2x8x8xf32> to vector<1x2x8x8xf32>
    %219 = vector.shape_cast %213 : vector<2x8x8xf32> to vector<1x2x8x8xf32>
    %220 = vector.shape_cast %215 : vector<2x8x8xf32> to vector<1x2x8x8xf32>
    %221 = vector.shape_cast %217 : vector<2x8x8xf32> to vector<1x2x8x8xf32>
    %222 = tpu.concatenate %218, %219, %220, %221 in 0 : vector<1x2x8x8xf32>, vector<1x2x8x8xf32>, vector<1x2x8x8xf32>, vector<1x2x8x8xf32> -> vector<4x2x8x8xf32>
    %223 = vector.shape_cast %222 : vector<4x2x8x8xf32> to vector<8x8x8xf32>
    %224 = vector.extract_strided_slice %195 {offsets = [0, 64], sizes = [16, 8], strides = [1, 1]} : vector<16x96xf32> to vector<16x8xf32>
    %225 = vector.shape_cast %224 : vector<16x8xf32> to vector<2x8x8xf32>
    %226 = vector.extract_strided_slice %195 {offsets = [0, 72], sizes = [16, 8], strides = [1, 1]} : vector<16x96xf32> to vector<16x8xf32>
    %227 = vector.shape_cast %226 : vector<16x8xf32> to vector<2x8x8xf32>
    %228 = vector.extract_strided_slice %195 {offsets = [0, 80], sizes = [16, 8], strides = [1, 1]} : vector<16x96xf32> to vector<16x8xf32>
    %229 = vector.shape_cast %228 : vector<16x8xf32> to vector<2x8x8xf32>
    %230 = vector.extract_strided_slice %195 {offsets = [0, 88], sizes = [16, 8], strides = [1, 1]} : vector<16x96xf32> to vector<16x8xf32>
    %231 = vector.shape_cast %230 : vector<16x8xf32> to vector<2x8x8xf32>
    %232 = vector.shape_cast %225 : vector<2x8x8xf32> to vector<1x2x8x8xf32>
    %233 = vector.shape_cast %227 : vector<2x8x8xf32> to vector<1x2x8x8xf32>
    %234 = vector.shape_cast %229 : vector<2x8x8xf32> to vector<1x2x8x8xf32>
    %235 = vector.shape_cast %231 : vector<2x8x8xf32> to vector<1x2x8x8xf32>
    %236 = tpu.concatenate %232, %233, %234, %235 in 0 : vector<1x2x8x8xf32>, vector<1x2x8x8xf32>, vector<1x2x8x8xf32>, vector<1x2x8x8xf32> -> vector<4x2x8x8xf32>
    %237 = vector.shape_cast %236 : vector<4x2x8x8xf32> to vector<8x8x8xf32>
    %238 = arith.truncf %209 : vector<8x8x8xf32> to vector<8x8x8xbf16>
    %239 = arith.truncf %223 : vector<8x8x8xf32> to vector<8x8x8xbf16>
    %cst_93 = arith.constant dense<0.000000e+00> : vector<8x8x8xf32>
    %240 = tpu.matmul %238, %239, %cst_93 {dimension_numbers = #tpu.dot_dimension_numbers<[2], [2], [1], [1], [0, 0, 0, 1, 1, 1], [0], [0]>} : vector<8x8x8xbf16>, vector<8x8x8xbf16>, vector<8x8x8xf32> -> vector<8x8x8xf32>
    %cst_94 = arith.constant dense<0xFF800000> : vector<8x8xf32>
    %241 = vector.multi_reduction <maximumf>, %240, %cst_94 [2] : vector<8x8x8xf32> to vector<8x8xf32>
    %242 = vector.shape_cast %241 : vector<8x8xf32> to vector<8x8x1xf32>
    %243 = vector.broadcast %242 : vector<8x8x1xf32> to vector<8x8x8xf32>
    %244 = arith.subf %240, %243 : vector<8x8x8xf32>
    %245 = math.exp %244 : vector<8x8x8xf32>
    %cst_95 = arith.constant dense<0.000000e+00> : vector<8x8xf32>
    %246 = vector.multi_reduction <add>, %245, %cst_95 [2] : vector<8x8x8xf32> to vector<8x8xf32>
    %247 = vector.shape_cast %246 : vector<8x8xf32> to vector<8x8x1xf32>
    %248 = tpu.reciprocal %247 {approx = true} : vector<8x8x1xf32> -> vector<8x8x1xf32>
    %249 = vector.broadcast %248 : vector<8x8x1xf32> to vector<8x8x8xf32>
    %250 = arith.mulf %245, %249 : vector<8x8x8xf32>
    %251 = arith.truncf %250 : vector<8x8x8xf32> to vector<8x8x8xbf16>
    %252 = arith.truncf %237 : vector<8x8x8xf32> to vector<8x8x8xbf16>
    %cst_96 = arith.constant dense<0.000000e+00> : vector<8x8x8xf32>
    %253 = tpu.matmul %251, %252, %cst_96 {dimension_numbers = #tpu.dot_dimension_numbers<[2], [1], [1], [2], [0, 0, 0, 1, 1, 2], [0], [0]>} : vector<8x8x8xbf16>, vector<8x8x8xbf16>, vector<8x8x8xf32> -> vector<8x8x8xf32>
    %254 = arith.truncf %253 : vector<8x8x8xf32> to vector<8x8x8xbf16>
    %c1_97 = arith.constant 1 : index
    %c0_98 = arith.constant 0 : index
    %c0_99 = arith.constant 0 : index
    %c0_100 = arith.constant 0 : index
    %255 = vector.load %arg8[%c1_97, %c0_98, %c0_99, %c0_100] : memref<2x8x8x32xbf16, #tpu.memory_space<vmem>>, vector<1x8x8x32xbf16>
    %256 = vector.shape_cast %255 : vector<1x8x8x32xbf16> to vector<8x8x32xbf16>
    %cst_101 = arith.constant dense<0.000000e+00> : vector<8x8x32xf32>
    %257 = tpu.matmul %254, %256, %cst_101 {dimension_numbers = #tpu.dot_dimension_numbers<[2], [1], [1], [2], [0, 0, 0, 1, 1, 2], [0], [0]>} : vector<8x8x8xbf16>, vector<8x8x32xbf16>, vector<8x8x32xf32> -> vector<8x8x32xf32>
    %258 = vector.shape_cast %257 : vector<8x8x32xf32> to vector<4x2x8x32xf32>
    %259 = vector.extract_strided_slice %258 {offsets = [0, 0, 0, 0], sizes = [1, 2, 8, 32], strides = [1, 1, 1, 1]} : vector<4x2x8x32xf32> to vector<1x2x8x32xf32>
    %260 = vector.shape_cast %259 : vector<1x2x8x32xf32> to vector<2x8x32xf32>
    %261 = vector.extract_strided_slice %258 {offsets = [1, 0, 0, 0], sizes = [1, 2, 8, 32], strides = [1, 1, 1, 1]} : vector<4x2x8x32xf32> to vector<1x2x8x32xf32>
    %262 = vector.shape_cast %261 : vector<1x2x8x32xf32> to vector<2x8x32xf32>
    %263 = arith.addf %260, %262 : vector<2x8x32xf32>
    %264 = vector.extract_strided_slice %258 {offsets = [2, 0, 0, 0], sizes = [1, 2, 8, 32], strides = [1, 1, 1, 1]} : vector<4x2x8x32xf32> to vector<1x2x8x32xf32>
    %265 = vector.shape_cast %264 : vector<1x2x8x32xf32> to vector<2x8x32xf32>
    %266 = arith.addf %263, %265 : vector<2x8x32xf32>
    %267 = vector.extract_strided_slice %258 {offsets = [3, 0, 0, 0], sizes = [1, 2, 8, 32], strides = [1, 1, 1, 1]} : vector<4x2x8x32xf32> to vector<1x2x8x32xf32>
    %268 = vector.shape_cast %267 : vector<1x2x8x32xf32> to vector<2x8x32xf32>
    %269 = arith.addf %266, %268 : vector<2x8x32xf32>
    %270 = vector.shape_cast %269 : vector<2x8x32xf32> to vector<16x32xf32>
    %c1_102 = arith.constant 1 : index
    %c0_103 = arith.constant 0 : index
    %c0_104 = arith.constant 0 : index
    %271 = vector.load %arg9[%c1_102, %c0_103, %c0_104] : memref<2x1x32xf32, #tpu.memory_space<vmem>>, vector<1x1x32xf32>
    %272 = vector.shape_cast %271 : vector<1x1x32xf32> to vector<1x32xf32>
    %273 = vector.broadcast %272 : vector<1x32xf32> to vector<16x32xf32>
    %274 = arith.addf %270, %273 : vector<16x32xf32>
    %275 = arith.addf %187, %274 : vector<16x32xf32>
    %c1_105 = arith.constant 1 : index
    %c0_106 = arith.constant 0 : index
    %c0_107 = arith.constant 0 : index
    %276 = vector.load %arg10[%c1_105, %c0_106, %c0_107] : memref<2x1x32xf32, #tpu.memory_space<vmem>>, vector<1x1x32xf32>
    %277 = vector.shape_cast %276 : vector<1x1x32xf32> to vector<1x32xf32>
    %c1_108 = arith.constant 1 : index
    %c0_109 = arith.constant 0 : index
    %c0_110 = arith.constant 0 : index
    %278 = vector.load %arg11[%c1_108, %c0_109, %c0_110] : memref<2x1x32xf32, #tpu.memory_space<vmem>>, vector<1x1x32xf32>
    %279 = vector.shape_cast %278 : vector<1x1x32xf32> to vector<1x32xf32>
    %cst_111 = arith.constant dense<0.000000e+00> : vector<16xf32>
    %280 = vector.multi_reduction <add>, %275, %cst_111 [1] : vector<16x32xf32> to vector<16xf32>
    %281 = vector.shape_cast %280 : vector<16xf32> to vector<16x1xf32>
    %cst_112 = arith.constant 3.200000e+01 : f32
    %282 = vector.broadcast %cst_112 : f32 to vector<16x1xf32>
    %283 = arith.divf %281, %282 : vector<16x1xf32>
    %284 = vector.broadcast %283 : vector<16x1xf32> to vector<16x32xf32>
    %285 = arith.subf %275, %284 : vector<16x32xf32>
    %286 = arith.mulf %285, %285 : vector<16x32xf32>
    %cst_113 = arith.constant dense<0.000000e+00> : vector<16xf32>
    %287 = vector.multi_reduction <add>, %286, %cst_113 [1] : vector<16x32xf32> to vector<16xf32>
    %288 = vector.shape_cast %287 : vector<16xf32> to vector<16x1xf32>
    %cst_114 = arith.constant 3.200000e+01 : f32
    %289 = vector.broadcast %cst_114 : f32 to vector<16x1xf32>
    %290 = arith.divf %288, %289 : vector<16x1xf32>
    %291 = vector.broadcast %283 : vector<16x1xf32> to vector<16x32xf32>
    %292 = arith.subf %275, %291 : vector<16x32xf32>
    %cst_115 = arith.constant 9.99999974E-6 : f32
    %293 = vector.broadcast %cst_115 : f32 to vector<16x1xf32>
    %294 = arith.addf %290, %293 : vector<16x1xf32>
    %295 = math.rsqrt %294 : vector<16x1xf32>
    %296 = vector.broadcast %295 : vector<16x1xf32> to vector<16x32xf32>
    %297 = arith.mulf %292, %296 : vector<16x32xf32>
    %298 = vector.broadcast %277 : vector<1x32xf32> to vector<16x32xf32>
    %299 = arith.mulf %297, %298 : vector<16x32xf32>
    %300 = vector.broadcast %279 : vector<1x32xf32> to vector<16x32xf32>
    %301 = arith.addf %299, %300 : vector<16x32xf32>
    %302 = arith.truncf %301 : vector<16x32xf32> to vector<16x32xbf16>
    %c1_116 = arith.constant 1 : index
    %c0_117 = arith.constant 0 : index
    %c0_118 = arith.constant 0 : index
    %303 = vector.load %arg12[%c1_116, %c0_117, %c0_118] : memref<2x32x128xbf16, #tpu.memory_space<vmem>>, vector<1x32x128xbf16>
    %304 = vector.shape_cast %303 : vector<1x32x128xbf16> to vector<32x128xbf16>
    %cst_119 = arith.constant dense<0.000000e+00> : vector<16x128xf32>
    %305 = tpu.matmul %302, %304, %cst_119 {dimension_numbers = #tpu.dot_dimension_numbers<[1], [0], [0], [1], [0, 0, 1, 1], [], []>} : vector<16x32xbf16>, vector<32x128xbf16>, vector<16x128xf32> -> vector<16x128xf32>
    %c1_120 = arith.constant 1 : index
    %c0_121 = arith.constant 0 : index
    %c0_122 = arith.constant 0 : index
    %306 = vector.load %arg13[%c1_120, %c0_121, %c0_122] : memref<2x1x128xf32, #tpu.memory_space<vmem>>, vector<1x1x128xf32>
    %307 = vector.shape_cast %306 : vector<1x1x128xf32> to vector<1x128xf32>
    %308 = vector.broadcast %307 : vector<1x128xf32> to vector<16x128xf32>
    %309 = arith.addf %305, %308 : vector<16x128xf32>
    %cst_123 = arith.constant 0.000000e+00 : f32
    %310 = vector.broadcast %cst_123 : f32 to vector<16x128xf32>
    %311 = arith.maximumf %309, %310 : vector<16x128xf32>
    %312 = arith.truncf %311 : vector<16x128xf32> to vector<16x128xbf16>
    %c1_124 = arith.constant 1 : index
    %c0_125 = arith.constant 0 : index
    %c0_126 = arith.constant 0 : index
    %313 = vector.load %arg14[%c1_124, %c0_125, %c0_126] : memref<2x128x32xbf16, #tpu.memory_space<vmem>>, vector<1x128x32xbf16>
    %314 = vector.shape_cast %313 : vector<1x128x32xbf16> to vector<128x32xbf16>
    %cst_127 = arith.constant dense<0.000000e+00> : vector<16x32xf32>
    %315 = tpu.matmul %312, %314, %cst_127 {dimension_numbers = #tpu.dot_dimension_numbers<[1], [0], [0], [1], [0, 0, 1, 1], [], []>} : vector<16x128xbf16>, vector<128x32xbf16>, vector<16x32xf32> -> vector<16x32xf32>
    %c1_128 = arith.constant 1 : index
    %c0_129 = arith.constant 0 : index
    %c0_130 = arith.constant 0 : index
    %316 = vector.load %arg15[%c1_128, %c0_129, %c0_130] : memref<2x1x32xf32, #tpu.memory_space<vmem>>, vector<1x1x32xf32>
    %317 = vector.shape_cast %316 : vector<1x1x32xf32> to vector<1x32xf32>
    %318 = vector.broadcast %317 : vector<1x32xf32> to vector<16x32xf32>
    %319 = arith.addf %315, %318 : vector<16x32xf32>
    %320 = arith.addf %301, %319 : vector<16x32xf32>
    %c1_131 = arith.constant 1 : index
    %c0_132 = arith.constant 0 : index
    %c0_133 = arith.constant 0 : index
    %321 = vector.load %arg16[%c1_131, %c0_132, %c0_133] : memref<2x1x32xf32, #tpu.memory_space<vmem>>, vector<1x1x32xf32>
    %322 = vector.shape_cast %321 : vector<1x1x32xf32> to vector<1x32xf32>
    %c1_134 = arith.constant 1 : index
    %c0_135 = arith.constant 0 : index
    %c0_136 = arith.constant 0 : index
    %323 = vector.load %arg17[%c1_134, %c0_135, %c0_136] : memref<2x1x32xf32, #tpu.memory_space<vmem>>, vector<1x1x32xf32>
    %324 = vector.shape_cast %323 : vector<1x1x32xf32> to vector<1x32xf32>
    %cst_137 = arith.constant dense<0.000000e+00> : vector<16xf32>
    %325 = vector.multi_reduction <add>, %320, %cst_137 [1] : vector<16x32xf32> to vector<16xf32>
    %326 = vector.shape_cast %325 : vector<16xf32> to vector<16x1xf32>
    %cst_138 = arith.constant 3.200000e+01 : f32
    %327 = vector.broadcast %cst_138 : f32 to vector<16x1xf32>
    %328 = arith.divf %326, %327 : vector<16x1xf32>
    %329 = vector.broadcast %328 : vector<16x1xf32> to vector<16x32xf32>
    %330 = arith.subf %320, %329 : vector<16x32xf32>
    %331 = arith.mulf %330, %330 : vector<16x32xf32>
    %cst_139 = arith.constant dense<0.000000e+00> : vector<16xf32>
    %332 = vector.multi_reduction <add>, %331, %cst_139 [1] : vector<16x32xf32> to vector<16xf32>
    %333 = vector.shape_cast %332 : vector<16xf32> to vector<16x1xf32>
    %cst_140 = arith.constant 3.200000e+01 : f32
    %334 = vector.broadcast %cst_140 : f32 to vector<16x1xf32>
    %335 = arith.divf %333, %334 : vector<16x1xf32>
    %336 = vector.broadcast %328 : vector<16x1xf32> to vector<16x32xf32>
    %337 = arith.subf %320, %336 : vector<16x32xf32>
    %cst_141 = arith.constant 9.99999974E-6 : f32
    %338 = vector.broadcast %cst_141 : f32 to vector<16x1xf32>
    %339 = arith.addf %335, %338 : vector<16x1xf32>
    %340 = math.rsqrt %339 : vector<16x1xf32>
    %341 = vector.broadcast %340 : vector<16x1xf32> to vector<16x32xf32>
    %342 = arith.mulf %337, %341 : vector<16x32xf32>
    %343 = vector.broadcast %322 : vector<1x32xf32> to vector<16x32xf32>
    %344 = arith.mulf %342, %343 : vector<16x32xf32>
    %345 = vector.broadcast %324 : vector<1x32xf32> to vector<16x32xf32>
    %346 = arith.addf %344, %345 : vector<16x32xf32>
    %347 = vector.shape_cast %346 : vector<16x32xf32> to vector<2x8x32xf32>
    %c0_142 = arith.constant 0 : index
    %c0_143 = arith.constant 0 : index
    %c0_144 = arith.constant 0 : index
    %348 = vector.load %arg18[%c0_142, %c0_143, %c0_144] : memref<2x8x32xf32, #tpu.memory_space<vmem>>, vector<2x8x32xf32>
    tpu.vector_store %arg18[%c0_142, %c0_143, %c0_144], %347 {strides = array<i32>} : memref<2x8x32xf32, #tpu.memory_space<vmem>>, vector<2x8x32xf32>,
    return
  }
  func.func @transform_0(%arg0: i32) -> (i32, i32, i32) {
    %c0_i32 = arith.constant 0 : i32
    %c0_i32_0 = arith.constant 0 : i32
    %c0_i32_1 = arith.constant 0 : i32
    return %arg0, %c0_i32, %c0_i32_0 : i32, i32, i32
  }
  func.func @transform_1(%arg0: i32) -> (i32, i32) {
    %c0_i32 = arith.constant 0 : i32
    %c0_i32_0 = arith.constant 0 : i32
    %c0_i32_1 = arith.constant 0 : i32
    return %c0_i32, %c0_i32_0 : i32, i32
  }
  func.func @transform_2(%arg0: i32) -> (i32, i32) {
    %c0_i32 = arith.constant 0 : i32
    %c0_i32_0 = arith.constant 0 : i32
    %c0_i32_1 = arith.constant 0 : i32
    return %c0_i32, %c0_i32_0 : i32, i32
  }
  func.func @transform_3(%arg0: i32) -> (i32, i32) {
    %c0_i32 = arith.constant 0 : i32
    %c0_i32_0 = arith.constant 0 : i32
    %c0_i32_1 = arith.constant 0 : i32
    return %c0_i32, %c0_i32_0 : i32, i32
  }
  func.func @transform_4(%arg0: i32) -> (i32, i32) {
    %c0_i32 = arith.constant 0 : i32
    %c0_i32_0 = arith.constant 0 : i32
    %c0_i32_1 = arith.constant 0 : i32
    return %c0_i32, %c0_i32_0 : i32, i32
  }
  func.func @transform_5(%arg0: i32) -> (i32, i32, i32) {
    %c0_i32 = arith.constant 0 : i32
    %c0_i32_0 = arith.constant 0 : i32
    %c0_i32_1 = arith.constant 0 : i32
    %c0_i32_2 = arith.constant 0 : i32
    return %c0_i32, %c0_i32_0, %c0_i32_1 : i32, i32, i32
  }
  func.func @transform_6(%arg0: i32) -> (i32, i32, i32) {
    %c0_i32 = arith.constant 0 : i32
    %c0_i32_0 = arith.constant 0 : i32
    %c0_i32_1 = arith.constant 0 : i32
    %c0_i32_2 = arith.constant 0 : i32
    return %c0_i32, %c0_i32_0, %c0_i32_1 : i32, i32, i32
  }
  func.func @transform_7(%arg0: i32) -> (i32, i32, i32, i32) {
    %c0_i32 = arith.constant 0 : i32
    %c0_i32_0 = arith.constant 0 : i32
    %c0_i32_1 = arith.constant 0 : i32
    %c0_i32_2 = arith.constant 0 : i32
    %c0_i32_3 = arith.constant 0 : i32
    return %c0_i32, %c0_i32_0, %c0_i32_1, %c0_i32_2 : i32, i32, i32, i32
  }
  func.func @transform_8(%arg0: i32) -> (i32, i32, i32) {
    %c0_i32 = arith.constant 0 : i32
    %c0_i32_0 = arith.constant 0 : i32
    %c0_i32_1 = arith.constant 0 : i32
    %c0_i32_2 = arith.constant 0 : i32
    return %c0_i32, %c0_i32_0, %c0_i32_1 : i32, i32, i32
  }
  func.func @transform_9(%arg0: i32) -> (i32, i32, i32) {
    %c0_i32 = arith.constant 0 : i32
    %c0_i32_0 = arith.constant 0 : i32
    %c0_i32_1 = arith.constant 0 : i32
    %c0_i32_2 = arith.constant 0 : i32
    return %c0_i32, %c0_i32_0, %c0_i32_1 : i32, i32, i32
  }
  func.func @transform_10(%arg0: i32) -> (i32, i32, i32) {
    %c0_i32 = arith.constant 0 : i32
    %c0_i32_0 = arith.constant 0 : i32
    %c0_i32_1 = arith.constant 0 : i32
    %c0_i32_2 = arith.constant 0 : i32
    return %c0_i32, %c0_i32_0, %c0_i32_1 : i32, i32, i32
  }
  func.func @transform_11(%arg0: i32) -> (i32, i32, i32) {
    %c0_i32 = arith.constant 0 : i32
    %c0_i32_0 = arith.constant 0 : i32
    %c0_i32_1 = arith.constant 0 : i32
    %c0_i32_2 = arith.constant 0 : i32
    return %c0_i32, %c0_i32_0, %c0_i32_1 : i32, i32, i32
  }
  func.func @transform_12(%arg0: i32) -> (i32, i32, i32) {
    %c0_i32 = arith.constant 0 : i32
    %c0_i32_0 = arith.constant 0 : i32
    %c0_i32_1 = arith.constant 0 : i32
    %c0_i32_2 = arith.constant 0 : i32
    return %c0_i32, %c0_i32_0, %c0_i32_1 : i32, i32, i32
  }
  func.func @transform_13(%arg0: i32) -> (i32, i32, i32) {
    %c0_i32 = arith.constant 0 : i32
    %c0_i32_0 = arith.constant 0 : i32
    %c0_i32_1 = arith.constant 0 : i32
    %c0_i32_2 = arith.constant 0 : i32
    return %c0_i32, %c0_i32_0, %c0_i32_1 : i32, i32, i32
  }
  func.func @transform_14(%arg0: i32) -> (i32, i32, i32) {
    %c0_i32 = arith.constant 0 : i32
    %c0_i32_0 = arith.constant 0 : i32
    %c0_i32_1 = arith.constant 0 : i32
    %c0_i32_2 = arith.constant 0 : i32
    return %c0_i32, %c0_i32_0, %c0_i32_1 : i32, i32, i32
  }
  func.func @transform_15(%arg0: i32) -> (i32, i32, i32) {
    %c0_i32 = arith.constant 0 : i32
    %c0_i32_0 = arith.constant 0 : i32
    %c0_i32_1 = arith.constant 0 : i32
    %c0_i32_2 = arith.constant 0 : i32
    return %c0_i32, %c0_i32_0, %c0_i32_1 : i32, i32, i32
  }
  func.func @transform_16(%arg0: i32) -> (i32, i32, i32) {
    %c0_i32 = arith.constant 0 : i32
    %c0_i32_0 = arith.constant 0 : i32
    %c0_i32_1 = arith.constant 0 : i32
    %c0_i32_2 = arith.constant 0 : i32
    return %c0_i32, %c0_i32_0, %c0_i32_1 : i32, i32, i32
  }
  func.func @transform_17(%arg0: i32) -> (i32, i32, i32) {
    %c0_i32 = arith.constant 0 : i32
    %c0_i32_0 = arith.constant 0 : i32
    %c0_i32_1 = arith.constant 0 : i32
    return %arg0, %c0_i32, %c0_i32_0 : i32, i32, i32
  }
}

</mosaic_0001>

<bundles_post_ra>
// kernel: tpu_custom_call.1
= control target key start
LH: loop header
LB: loop body
LE: loop exit
PB: predicated region body
PF: predicated region fallthrough
CT: control target
= control target key end

     0   :  { %s4436_s0 = inlined_call_operand.vmem [shape: f32[4,8,128], index: 0, kind: input, shape index: {}]   ;;  %s4437_s1 = inlined_call_operand.vmem [shape: f32[1,128], index: 1, kind: input, shape index: {}]   ;;  %s4438_s2 = inlined_call_operand.vmem [shape: f32[1,128], index: 2, kind: input, shape index: {}]   ;;  %s4439_s3 = inlined_call_operand.vmem [shape: bf16[640,32], index: 3, kind: input, shape index: {}]   ;;  %s4440_s4 = inlined_call_operand.vmem [shape: f32[1,32], index: 4, kind: input, shape index: {}]   ;;  %s4441_s5 = inlined_call_operand.vmem [shape: bf16[2,32,96], index: 5, kind: input, shape index: {}]   ;;  %s4442_s6 = inlined_call_operand.vmem [shape: f32[2,1,96], index: 6, kind: input, shape index: {}]   ;;  %s4443_s7 = inlined_call_operand.vmem [shape: bf16[2,8,8,32], index: 7, kind: input, shape index: {}]   ;;  %s4444_s8 = inlined_call_operand.vmem [shape: f32[2,1,32], index: 8, kind: input, shape index: {}]   ;;  %s4445_s9 = inlined_call_operand.vmem [shape: f32[2,1,32], index: 9, kind: input, shape index: {}]   ;;  %s4446_s10 = inlined_call_operand.vmem [shape: f32[2,1,32], index: 10, kind: input, shape index: {}]   ;;  %s4447_s11 = inlined_call_operand.vmem [shape: bf16[2,32,128], index: 11, kind: input, shape index: {}]   ;;  %s4448_s12 = inlined_call_operand.vmem [shape: f32[2,1,128], index: 12, kind: input, shape index: {}]   ;;  %s4449_s13 = inlined_call_operand.vmem [shape: bf16[2,128,32], index: 13, kind: input, shape index: {}]   ;;  %s4450_s14 = inlined_call_operand.vmem [shape: f32[2,1,32], index: 14, kind: input, shape index: {}]   ;;  %s4451_s15 = inlined_call_operand.vmem [shape: f32[2,1,32], index: 15, kind: input, shape index: {}]   ;;  %s4452_s16 = inlined_call_operand.vmem [shape: f32[2,1,32], index: 16, kind: input, shape index: {}]   ;;  %s4453_s17 = inlined_call_operand.hbm [shape: f32[4,8,32], index: 17, kind: output, shape index: {}]  }
   0x1   :  { %4464 = sst [smem:[#allocation13_spill]] %s4436_s0 }
   0x2   :  { %4465 = sst [smem:[#allocation14_spill]] %s4437_s1 }
   0x3   :  { %4466 = sst [smem:[#allocation15_spill]] %s4438_s2 }
   0x4   :  { %4467 = sst [smem:[#allocation16_spill]] %s4439_s3 }
   0x5   :  { %22 = vsyncpa [#allocation4], 0 }
   0x6   :  { %24 = vsyncpa [#allocation4 + $0x1], 0  ;;  %s3710_s24 = smov 0   ;;  %s3712_s25 = smov 0  }
   0x7   :  { %s3714_s26 = smov 0   ;;  %s3716_s27 = smov 0  }
   0x8 LB: > { %4468 = sst [smem:[#allocation6_spill]] %s3597_s24  ;;  %s3731_s28 = sadd.s32 4294967295, %s3609_s27   ;;  %s3609_s27 = sphi %s3716_s27, %s4486_s27   ;;  %s3605_s26 = sphi %s3714_s26, %s4488_s26   ;;  %s3601_s25 = sphi %s3712_s25, %s4490_s25   ;;  %s3597_s24 = sphi %s3710_s24, %s4489_s24  }
   0x9   : > { %4469 = sst [smem:[#allocation7_spill]] %s3605_s26  ;;  %s2968_s29 = sadd.s32 4294967294, %s3609_s27  }
   0xa   : > { %4470 = sst [smem:[#allocation8_spill]] %s3609_s27  ;;  %s3735_s0 = sadd.s32 1, %s3609_s27  }
   0xb   : > { %4471 = sst [smem:[#allocation9_spill]] %s3735_s0  ;;  %s399_s30 = sadd.s32 1, %s3605_s26 }
   0xc   : > { %s396_s18 = ssub.s32 %s3609_s27, %s3735_s0  ;;  %p409_p0 = scmp.ne.s32.totalorder %s3605_s26, %s3601_s25 }
   0xd   : > { %p397_p1 = scmp.eq.s32.totalorder %s396_s18, 0  ;;  %p410_p2 = scmp.eq.s32.totalorder %s3731_s28, 1 }
   0xe   : > { %p415_p3 = scmp.ne.s32.totalorder %s3601_s25, %s3597_s24  ;;  %p416_p4 = scmp.eq.s32.totalorder %s2968_s29, 1 }
   0xf   : > { %s3746_s19 = scalar_select %p397_p1, %s3605_s26, %s399_s30  }
  0x10   : > { %p3748_p5 = por %p410_p2, %p409_p0  ;;  %p3752_p6 = por %p416_p4, %p415_p3 }
  0x11   : > { %4472 = sst [smem:[#allocation10_spill]] %s3746_s19  ;;  %p2971_p7 = scmp.ge.s32.totalorder %s3609_s27, 1 }
  0x12   : > { %s4473_s1 = scalar_select %p3748_p5, 1, 0 }
  0x13   : > { %s4475_s20 = scalar_select %p3752_p6, 1, 0 }
  0x14   : > { %4474 = sst [smem:[#allocation11_spill]] %s4473_s1  ;;  %p491_p8 = scmp.lt.s32.totalorder %s3609_s27, 3 }
  0x15   : > { %4476 = sst [smem:[#allocation12_spill]] %s4475_s20 }
  0x16   : > { %p492_p9 = pnand %p2971_p7, %p491_p8 }
  0x17   : > { %s4477_s3 = sld [smem:[#allocation16_spill]] (!%p492_p9)  ;;  %s2973_s30 = sshll.u32 (!%p492_p9), %s3731_s28, 1 }
  0x18   : > { %495 = sbr.rel (%p492_p9) target bundleno = 4057 (0xfd9), region = 88  ;;  %p544_p10 = scmp.lt.s32.totalorder (!%p492_p9), %s2973_s30, 3 }
  0x19   : > { %s4478_s27 = sld [smem:[#allocation13_spill]] (!%p492_p9)  ;;  %s3612_s18 = smov (!%p492_p9), 96  }
  0x1a   : > { %s4480_s2 = sld [smem:[#allocation15_spill]] (!%p492_p9)  ;;  %s3614_s26 = smov (!%p492_p9), 120  }
  0x1b   : > { %s3615_s0 = smov (!%p492_p9), 112   ;;  %s4462_s24 = smov (!%p492_p9), 64  }
  0x1d   : > { %v3335_v0 = vld [vmem:[%s4477_s3 + $0x38] sm:$0xff]  ;;  %v3611_v4 = vmov 0.0   ;;  %v3334_v5 = vld [vmem:[%s4477_s3 + $0x30] sm:$0xff]  ;;  %s4492_s30 = smov (!%p544_p10, %s2973_s30), 3  ;;  %v3333_v9 = vld [vmem:[%s4477_s3 + $0x28] sm:$0xff]  ;;  %vm1005_vm0 = vcmask 261120  }
  0x1e   : > { %v3351_v1 = vld [vmem:[%s4477_s3 + $0xb8] sm:$0xff]  ;;  %567 = vst [vmem:[#allocation2] sm:$0xff] %v3611_v4  ;;  %912 = vmatpush.bf16.msra.mxu0 %v3335_v0  ;;  %v3350_v6 = vld [vmem:[%s4477_s3 + $0xb0] sm:$0xff]  ;;  %s2974_s21 = sshll.u32 %s4492_s30, 3  ;;  %v3349_v10 = vld [vmem:[%s4477_s3 + $0xa8] sm:$0xff]  ;;  %vm1056_vm1 = vcmask 64512  }
  0x1f   : > { %v3359_v2 = vld [vmem:[%s4477_s3 + $0xf8] sm:$0xff]  ;;  %940 = vmatpush.bf16.msra.mxu2 %v3351_v1  ;;  %568 = vst [vmem:[#allocation2 + $0x8] sm:$0xf] %v3611_v4  ;;  %v3358_v7 = vld [vmem:[%s4477_s3 + $0xf0] sm:$0xff]  ;;  %v3357_v11 = vld [vmem:[%s4477_s3 + $0xe8] sm:$0xff]  ;;  %s547_s1 = scalar_lea.vmem %s4478_s27, %s2974_s21  ;;  %s4479_s21 = sld [smem:[#allocation14_spill]] }
  0x20   : > { %v3343_v3 = vld [vmem:[%s4477_s3 + $0x78] sm:$0xff]  ;;  %954 = vmatpush.bf16.msra.mxu3 %v3359_v2  ;;  %v3342_v8 = vld [vmem:[%s4477_s3 + $0x70] sm:$0xff]  ;;  %569 = vst [vmem:[#allocation2 + $0x10] sm:$0xff] %v3611_v4  ;;  %v3341_v12 = vld [vmem:[%s4477_s3 + $0x68] sm:$0xff]  ;;  %vm1345_vm2 = vcmask 1043456  }
  0x21   : > { %926 = vmatpush.bf16.msra.mxu1 %v3343_v3  ;;  %570 = vst [vmem:[#allocation2 + $0x18] sm:$0xf] %v3611_v4  ;;  %v3332_v13 = vld [vmem:[%s4477_s3 + $0x20] sm:$0xff]  ;;  %v552_v18 = vld [vmem:[%s547_s1 + $0x8] sm:$0xff]  ;;  %v3331_v21 = vld [vmem:[%s4477_s3 + $0x18] sm:$0xff] }
  0x22   : > { %913 = vmatpush.bf16.msra.mxu0 %v3334_v5  ;;  %v3348_v14 = vld [vmem:[%s4477_s3 + $0xa0] sm:$0xff]  ;;  %v3347_v22 = vld [vmem:[%s4477_s3 + $0x98] sm:$0xff]  ;;  %v3330_v27 = vld [vmem:[%s4477_s3 + $0x10] sm:$0xff] }
  0x23   : > { %941 = vmatpush.bf16.msra.mxu2 %v3350_v6  ;;  %v3356_v15 = vld [vmem:[%s4477_s3 + $0xe0] sm:$0xff]  ;;  %v3355_v23 = vld [vmem:[%s4477_s3 + $0xd8] sm:$0xff]  ;;  %v3346_v28 = vld [vmem:[%s4477_s3 + $0x90] sm:$0xff] }
  0x24   : > { %955 = vmatpush.bf16.msra.mxu3 %v3358_v7  ;;  %v3340_v16 = vld [vmem:[%s4477_s3 + $0x60] sm:$0xff]  ;;  %v3339_v26 = vld [vmem:[%s4477_s3 + $0x58] sm:$0xff]  ;;  %v3354_v31 = vld [vmem:[%s4477_s3 + $0xd0] sm:$0xff] }
  0x25   : > { %927 = vmatpush.bf16.msra.mxu1 %v3342_v8  ;;  %v551_v17 = vld [vmem:[%s547_s1] sm:$0xff]  ;;  %v3338_v34 = vld [vmem:[%s4477_s3 + $0x50] sm:$0xff]  ;;  %v3329_v35 = vld [vmem:[%s4477_s3 + $0x8] sm:$0xff]  ;;  %s3613_s1 = smov 104  }
  0x26   : > { %914 = vmatpush.bf16.msra.mxu0 %v3333_v9  ;;  %v3446_v19 = vld [vmem:[%s4479_s21] ss:$0 sm:$0xff]  ;;  %v3345_v36 = vld [vmem:[%s4477_s3 + $0x88] sm:$0xff]  ;;  %v3367_v40 = vld [vmem:[%s4477_s3 + $0x138] sm:$0xff]  ;;  %s540_s21 = sand.u32 1, %s3601_s25  }
  0x27   : > { %942 = vmatpush.bf16.msra.mxu2 %v3349_v10  ;;  %v3447_v20 = vld [vmem:[%s4480_s2] ss:$0 sm:$0xff]  ;;  %v557_v24 = vmul.f32 %v3446_v19, %v551_v17  ;;  %v558_v25 = vmul.f32 %v3446_v19, %v552_v18  ;;  %v3353_v37 = vld [vmem:[%s4477_s3 + $0xc8] sm:$0xff]  ;;  %v3366_v53 = vld [vmem:[%s4477_s3 + $0x130] sm:$0xff] }
  0x28   : > { %956 = vmatpush.bf16.msra.mxu3 %v3357_v11  ;;  %v3337_v38 = vld [vmem:[%s4477_s3 + $0x48] sm:$0xff]  ;;  %v3328_v39 = vld [vmem:[%s4477_s3] sm:$0xff]  ;;  %v3363_v57 = vld [vmem:[%s4477_s3 + $0x118] sm:$0xff] }
  0x29   : > { %928 = vmatpush.bf16.msra.mxu1 %v3341_v12  ;;  %v563_v29 = vadd.f32 %v3447_v20, %v557_v24  ;;  %v564_v30 = vadd.f32 %v3447_v20, %v558_v25  ;;  %v3344_v41 = vld [vmem:[%s4477_s3 + $0x80] sm:$0xff]  ;;  %v3365_v55 = vld [vmem:[%s4477_s3 + $0x128] sm:$0xff]  ;;  %v3362_v58 = vld [vmem:[%s4477_s3 + $0x110] sm:$0xff] }
  0x2a   : > { %915 = vmatpush.bf16.msra.mxu0 %v3332_v13  ;;  %v3352_v42 = vld [vmem:[%s4477_s3 + $0xc0] sm:$0xff]  ;;  %v3361_v59 = vld [vmem:[%s4477_s3 + $0x108] sm:$0xff] }
  0x2b   : > { %943 = vmatpush.bf16.msra.mxu2 %v3348_v14  ;;  %v565_v32 = vmax.f32 %v563_v29, 0.0  ;;  %v566_v33 = vmax.f32 %v564_v30, 0.0  ;;  %v3336_v43 = vld [vmem:[%s4477_s3 + $0x40] sm:$0xff]  ;;  %v3369_v0 = vld [vmem:[%s4441_s5 + $0x8] sm:$0xff] }
  0x2c   : > { %957 = vmatpush.bf16.msra.mxu3 %v3356_v15  ;;  %v3364_v56 = vld [vmem:[%s4477_s3 + $0x120] sm:$0xff] }
  0x2d   : > { %929 = vmatpush.bf16.msra.mxu1 %v3340_v16  ;;  %571 = vst [vmem:[#allocation2 + $0x2] sm:$0xff] %v565_v32  ;;  %v585_v50 = vpack.c.bf16 %v566_v33, %v565_v32  ;;  %v3360_v60 = vld [vmem:[%s4477_s3 + $0x100] sm:$0xff] }
  0x2e   : > { %916 = vmatpush.bf16.msra.mxu0 %v3331_v21  ;;  %572 = vst [vmem:[#allocation2 + $0x12] sm:$0xff] %v566_v33  ;;  %v3368_v1 = vld [vmem:[%s4441_s5] sm:$0xff] }
  0x2f   : > { %944 = vmatpush.bf16.msra.mxu2 %v3347_v22  ;;  %v3448_v4 = vld [vmem:[%s4440_s4] ss:$0 sm:$0xff] }
  0x30   : > { %958 = vmatpush.bf16.msra.mxu3 %v3355_v23 }
  0x31   : > { %930 = vmatpush.bf16.msra.mxu1 %v3339_v26  ;;  %v3449_v26 = vld [vmem:[%s4442_s6] ss:$0 sm:$0xff] }
  0x32   : > { %917 = vmatpush.bf16.msra.mxu0 %v3330_v27 }
  0x33   : > { %945 = vmatpush.bf16.msra.mxu2 %v3346_v28 }
  0x34   : > { %959 = vmatpush.bf16.msra.mxu3 %v3354_v31  ;;  %v573_v44 = vld [vmem:[#allocation2] sm:$0xff] }
  0x35   : > { %931 = vmatpush.bf16.msra.mxu1 %v3338_v34  ;;  %v579_v45 = vld [vmem:[#allocation2 + $0x3] sm:$0xff]  ;;  %v574_v47 = vld [vmem:[#allocation2 + $0x10] sm:$0xff] }
  0x36   : > { %918 = vmatpush.bf16.msra.mxu0 %v3329_v35  ;;  %v575_v46 = vld [vmem:[#allocation2 + $0x1] sm:$0xff]  ;;  %v580_v48 = vld [vmem:[#allocation2 + $0x13] sm:$0xff]  ;;  %v583_v51 = vpack.c.bf16 %v574_v47, %v573_v44 }
  0x37   : > { %946 = vmatpush.bf16.msra.mxu2 %v3345_v36  ;;  %v576_v49 = vld [vmem:[#allocation2 + $0x11] sm:$0xff]  ;;  %v586_v52 = vpack.c.bf16 %v580_v48, %v579_v45  ;;  %v581_v61 = vld [vmem:[#allocation2 + $0x4] sm:$0xff] }
  0x38   : > { %960 = vmatpush.bf16.msra.mxu3 %v3353_v37  ;;  %v584_v54 = vpack.c.bf16 %v576_v49, %v575_v46  ;;  %v582_v62 = vld [vmem:[#allocation2 + $0x14] sm:$0xff] }
  0x39   : > { %932 = vmatpush.bf16.msra.mxu1 %v3337_v38  ;;  %v587_v63 = vpack.c.bf16 %v582_v62, %v581_v61 }
  0x3a   : > { %919 = vmatpush.bf16.msra.mxu0 %v3328_v39 }
  0x3b   : > { %947 = vmatpush.bf16.msra.mxu2 %v3344_v41 }
  0x3c   : > { %961 = vmatpush.bf16.msra.mxu3 %v3352_v42 }
  0x3d   : > { %933 = vmatpush.bf16.msra.mxu1 %v3336_v43  ;;  %920 = vmatmul.bf16.vlgmr.msra.gmra.mxu0 %v583_v51 }
  0x3e   : > { %968 = vmatpush.bf16.msrb.mxu0 %v3367_v40  ;;  %948 = vmatmul.bf16.vlgmr.msra.gmra.mxu2 %v585_v50 }
  0x3f   : > { %962 = vmatmul.bf16.vlgmr.msra.gmra.mxu3 %v586_v52 }
  0x40   : > { %934 = vmatmul.bf16.vlgmr.msra.gmra.mxu1 %v584_v54 }
  0x41   : > { %1015 = vmatpush.bf16.msrb.mxu1 %v3369_v0 }
  0x42   : > { %969 = vmatpush.bf16.msrb.mxu0 %v3366_v53 }
  0x45   : > { %1016 = vmatpush.bf16.msrb.mxu1 %v3368_v1 }
  0x46   : > { %970 = vmatpush.bf16.msrb.mxu0 %v3365_v55 }
  0x4a   : > { %971 = vmatpush.bf16.msrb.mxu0 %v3364_v56 }
  0x4e   : > { %972 = vmatpush.bf16.msrb.mxu0 %v3363_v57 }
  0x52   : > { %973 = vmatpush.bf16.msrb.mxu0 %v3362_v58 }
  0x56   : > { %974 = vmatpush.bf16.msrb.mxu0 %v3361_v59 }
  0x5a   : > { %975 = vmatpush.bf16.msrb.mxu0 %v3360_v60 }
  0x5d   : > { %976 = vmatmul.bf16.vlgmr.msrb.gmra.mxu0 %v587_v63 }
  0xba   : > { %v921_v2 = vpop.f32.mrf.mxu0 }
  0xbb   : > { %v922_v7 = vadd.f32 %v3448_v4, %v921_v2 }
  0xbd   : > { %v935_v3 = vpop.f32.mrf.mxu1 }
  0xbe   : > { %v936_v11 = vadd.f32 %v935_v3, %v922_v7 }
  0xc1   : > { %v949_v5 = vpop.f32.mrf.mxu2 }
  0xc2   : > { %v923_v6 = vpop.f32.mrf.mxu0  ;;  %v963_v8 = vpop.f32.mrf.mxu3  ;;  %v950_v15 = vadd.f32 %v949_v5, %v936_v11 }
  0xc3   : > { %v924_v9 = vadd.f32 %v3448_v4, %v923_v6 }
  0xc4   : > { %v964_v18 = vadd.f32 %v963_v8, %v950_v15 }
  0xc5   : > { %v937_v10 = vpop.f32.mrf.mxu1 }
  0xc6   : > { %v938_v12 = vadd.f32 %v937_v10, %v924_v9 }
  0xc9   : > { %v951_v13 = vpop.f32.mrf.mxu2 }
  0xca   : > { %v952_v16 = vadd.f32 %v951_v13, %v938_v12  ;;  %v965_v17 = vpop.f32.mrf.mxu3 }
  0xcc   : > { %v966_v19 = vadd.f32 %v965_v17, %v952_v16 }
  0xda   : > { %v977_v14 = vpop.f32.mrf.mxu0 }
  0xdb   : > { %v3897_v20 = vadd.f32 %v977_v14, %v964_v18 }
  0xdd   : > { %v982_v23 = vmax.f32 %v3897_v20, 0.0 }
  0xe2   : > { %v979_v21 = vpop.f32.mrf.mxu0 }
  0xe3   : > { %v3899_v22 = vadd.f32 %v979_v21, %v966_v19 }
  0xe5   : > { %v983_v24 = vmax.f32 %v3899_v22, 0.0 }
  0xe7   : > { %v984_v25 = vpack.c.bf16 %v983_v24, %v982_v23 }
  0xe9   : > { %3143 = vmatmul.msk.bf16.vlgmr.msrb.gmra.mxu1 %vm1005_vm0, %v984_v25 }
 0x166   : > { %v1018_v27 = vpop.f32.mrf.mxu1 }
 0x167   : > { %v1019_v28 = vadd.f32 %v3449_v26, %v1018_v27 }
 0x169   : > { %v1043_v29 = vpack.c.bf16 %v1019_v28, %v1019_v28 }
 0x16b   : > { %v1052_v30 = vunpack.c.l.b16 %v1043_v29 }
 0x16d   : > { %v3911_v31 = vpack.c.b16 %v1052_v30, %v1052_v30 }
 0x16e   : > { %v1020_v32 = vpop.f32.mrf.mxu1 }
 0x16f   : > { %v1021_v33 = vadd.f32 %v3449_v26, %v1020_v32  ;;  %1054 = vrot.lane.b32.xlu2 %v3911_v31, %s3612_s18 }
 0x171   : > { %1039 = vrot.lane.b32.xlu1 %v1021_v33, %s3613_s1  ;;  %v3441_v34 = vpack.i.bf16 %v1019_v28, %v1021_v33  ;;  %v1044_v35 = vpack.c.bf16 %v1021_v33, %v1021_v33 }
 0x173   : > { %3442 = vrot.lane.b32.xlu0 %v3441_v34, %s3614_s26  ;;  %v1077_v36 = vunpack.c.l.b16 %v1044_v35 }
 0x175   : > { %v3920_v37 = vpack.c.b16 %v1077_v36, %v1077_v36 }
 0x177   : > { %1037 = vrot.lane.b32.xlu2 %v1019_v28, %s3613_s1 }
 0x179   : > { %1033 = vrot.lane.b32.xlu1 %v1021_v33, %s3615_s0 }
 0x17b   : > { %1031 = vrot.lane.b32.xlu0 %v1019_v28, %s3615_s0 }
 0x183   : > { %1079 = vrot.lane.b32.xlu0 %v3920_v37, %s3612_s18 }
 0x1c9   : > { %v1055_v38 = vpop.permute.xlu2 %1054 }
 0x1ca   : > { %v1061_v39 = vsel %vm1056_vm1, %v1055_v38, 0 }
 0x1cb   : > { %1070 = vmatpush.bf16.xpose.msrb.mxu2 %v1061_v39 }
 0x1d1   : > { %v1038_v55 = vpop.permute.xlu2 %1037 }
 0x1d2   : > { %3144 = vmatmul.msk.bf16.vlgmr.msrb.gmra.mxu2 %vm1056_vm1, %v1043_v29  ;;  %v1049_v59 = vpack.c.bf16 %v1038_v55, %v1038_v55 }
 0x1d4   : > { %v1197_v0 = vunpack.c.l.b16 %v1049_v59 }
 0x1d6   : > { %v3947_v2 = vpack.c.b16 %v1197_v0, %v1197_v0 }
 0x1e3   : > { %v1040_v40 = vpop.permute.xlu1 %1039 }
 0x1e4   : > { %v1050_v49 = vpack.c.bf16 %v1040_v40, %v1040_v40 }
 0x1e5   : > { %v3443_v41 = vpop.permute.xlu0 %3442 }
 0x1e6   : > { %v3445_v42 = vunpack.i.h.bf16 %v3443_v41  ;;  %v3444_v43 = vunpack.i.l.bf16 %v3443_v41  ;;  %v1221_v56 = vunpack.c.l.b16 %v1050_v49 }
 0x1e8   : > { %v1045_v44 = vpack.c.bf16 %v3445_v42, %v3445_v42  ;;  %v1046_v45 = vpack.c.bf16 %v3444_v43, %v3444_v43  ;;  %v3936_v61 = vpack.c.b16 %v1221_v56, %v1221_v56 }
 0x1ea   : > { %v1101_v46 = vunpack.c.l.b16 %v1045_v44  ;;  %v1125_v47 = vunpack.c.l.b16 %v1046_v45 }
 0x1eb   : > { %v1034_v48 = vpop.permute.xlu1 %1033 }
 0x1ec   : > { %v1048_v50 = vpack.c.bf16 %v1034_v48, %v1034_v48  ;;  %v3926_v51 = vpack.c.b16 %v1125_v47, %v1125_v47  ;;  %v3928_v52 = vpack.c.b16 %v1101_v46, %v1101_v46 }
 0x1ed   : > { %v1032_v53 = vpop.permute.xlu0 %1031 }
 0x1ee   : > { %v1047_v54 = vpack.c.bf16 %v1032_v53, %v1032_v53  ;;  %1127 = vrot.lane.b32.xlu1 %v3926_v51, %s3612_s18  ;;  %1103 = vrot.lane.b32.xlu2 %v3928_v52, %s3612_s18  ;;  %v1173_v57 = vunpack.c.l.b16 %v1048_v50 }
 0x1f0   : > { %v1149_v58 = vunpack.c.l.b16 %v1047_v54  ;;  %v3938_v62 = vpack.c.b16 %v1173_v57, %v1173_v57 }
 0x1f2   : > { %v3934_v60 = vpack.c.b16 %v1149_v58, %v1149_v58 }
 0x1f4   : > { %1151 = vrot.lane.b32.xlu0 %v3934_v60, %s3612_s18 }
 0x1f5   : > { %v1080_v63 = vpop.permute.xlu0 %1079 }
 0x1f6   : > { %1223 = vrot.lane.b32.xlu1 %v3936_v61, %s3612_s18  ;;  %1175 = vrot.lane.b32.xlu2 %v3938_v62, %s3612_s18  ;;  %v1085_v1 = vsel %vm1056_vm1, %v1080_v63, 0 }
 0x1f7   : > { %1094 = vmatpush.bf16.xpose.msrb.mxu3 %v1085_v1 }
 0x1fc   : > { %1199 = vrot.lane.b32.xlu0 %v3947_v2, %s3612_s18 }
 0x1fe   : > { %3145 = vmatmul.msk.bf16.vlgmr.msrb.gmra.mxu3 %vm1056_vm1, %v1044_v35 }
 0x248   : > { %v1104_v3 = vpop.permute.xlu2 %1103 }
 0x249   : > { %v1109_v4 = vsel %vm1056_vm1, %v1104_v3, 0 }
 0x24a   : > { %1118 = vmatpush.bf16.xpose.msra.mxu1 %v1109_v4 }
 0x250   : > { %v1176_v5 = vpop.permute.xlu2 %1175 }
 0x251   : > { %v1181_v6 = vsel %vm1056_vm1, %v1176_v5, 0  ;;  %3146 = vmatmul.msk.bf16.vlgmr.msra.gmra.mxu1 %vm1056_vm1, %v1045_v44 }
 0x252   : > { %1190 = vmatpush.bf16.xpose.msrb.mxu1 %v1181_v6 }
 0x255   : > { %v1072_v7 = vpop.f32.mrf.mxu2 }
 0x256   : > { %v1244_v8 = vsel %vm1056_vm1, %v1072_v7, -inf }
 0x257   : > { %1245 = vmax.xlane.f32.xlu1 %v1244_v8 }
 0x25d   : > { %v1074_v9 = vpop.f32.mrf.mxu2 }
 0x260   : > { %v1128_v10 = vpop.permute.xlu1 %1127 }
 0x261   : > { %v1133_v11 = vsel %vm1056_vm1, %v1128_v10, 0  ;;  %3149 = vmatmul.msk.bf16.vlgmr.msrb.gmra.mxu1 %vm1056_vm1, %v1048_v50 }
 0x262   : > { %1142 = vmatpush.bf16.xpose.msra.mxu2 %v1133_v11 }
 0x266   : > { %v1152_v12 = vpop.permute.xlu0 %1151 }
 0x267   : > { %v1157_v13 = vsel %vm1056_vm1, %v1152_v12, 0 }
 0x268   : > { %1166 = vmatpush.bf16.xpose.msra.mxu3 %v1157_v13  ;;  %v1224_v14 = vpop.permute.xlu1 %1223 }
 0x269   : > { %v1229_v15 = vsel %vm1056_vm1, %v1224_v14, 0  ;;  %3147 = vmatmul.msk.bf16.vlgmr.msra.gmra.mxu2 %vm1056_vm1, %v1046_v45 }
 0x26a   : > { %1238 = vmatpush.bf16.xpose.msrb.mxu2 %v1229_v15 }
 0x26e   : > { %v1200_v16 = vpop.permute.xlu0 %1199 }
 0x26f   : > { %v1205_v17 = vsel %vm1056_vm1, %v1200_v16, 0  ;;  %3148 = vmatmul.msk.bf16.vlgmr.msra.gmra.mxu3 %vm1056_vm1, %v1047_v54 }
 0x270   : > { %1214 = vmatpush.bf16.xpose.msra.mxu1 %v1205_v17 }
 0x277   : > { %3150 = vmatmul.msk.bf16.vlgmr.msra.gmra.mxu1 %vm1056_vm1, %v1049_v59 }
 0x279   : > { %3151 = vmatmul.msk.bf16.vlgmr.msrb.gmra.mxu2 %vm1056_vm1, %v1050_v49 }
 0x281   : > { %v1096_v18 = vpop.f32.mrf.mxu3 }
 0x282   : > { %v1247_v19 = vsel %vm1056_vm1, %v1096_v18, -inf }
 0x283   : > { %1248 = vmax.xlane.f32.xlu0 %v1247_v19 }
 0x289   : > { %v1098_v21 = vpop.f32.mrf.mxu3 }
 0x2ca   : > { %v1246_v30 = vpop.xlane.xlu1 %1245 }
 0x2cb   : > { %v1268_v32 = vsub.f32 %v1072_v7, %v1246_v30 }
 0x2cd   : > { %v1276_v34 = vmul.f32 1.442695, %v1268_v32 }
 0x2ce   : > { %v1120_v25 = vpop.f32.mrf.mxu1 }
 0x2cf   : > { %v1250_v26 = vsel %vm1056_vm1, %v1120_v25, -inf  ;;  %3465 = vpow2.f32 %v1276_v34 }
 0x2d0   : > { %1251 = vmax.xlane.f32.xlu2 %v1250_v26 }
 0x2d5   : > { %v3972_v38 = vpop.eup %3465 }
 0x2d6   : > { %v1122_v27 = vpop.f32.mrf.mxu1  ;;  %v1292_v43 = vsel %vm1056_vm1, %v3972_v38, 0.0 }
 0x2de   : > { %v3967_v28 = vpop.f32.mrf.mxu1 }
 0x2df   : > { %v1259_v29 = vsel %vm1056_vm1, %v3967_v28, -inf }
 0x2e0   : > { %1260 = vmax.xlane.f32.xlu0 %v1259_v29 }
 0x2e6   : > { %v1194_v33 = vpop.f32.mrf.mxu1 }
 0x2ec   : > { %v1144_v35 = vpop.f32.mrf.mxu2 }
 0x2ed   : > { %v1253_v36 = vsel %vm1056_vm1, %v1144_v35, -inf }
 0x2ee   : > { %1254 = vmax.xlane.f32.xlu2 %v1253_v36 }
 0x2f2   : > { %v1168_v39 = vpop.f32.mrf.mxu3 }
 0x2f3   : > { %v1256_v40 = vsel %vm1056_vm1, %v1168_v39, -inf }
 0x2f4   : > { %1257 = vmax.xlane.f32.xlu1 %v1256_v40  ;;  %v1146_v41 = vpop.f32.mrf.mxu2  ;;  %v1216_v42 = vpop.f32.mrf.mxu1 }
 0x2f5   : > { %v1262_v48 = vsel %vm1056_vm1, %v1216_v42, -inf }
 0x2f6   : > { %v1249_v44 = vpop.xlane.xlu0 %1248  ;;  %1293 = vadd.xlane.f32.xlu2 %v1292_v43 }
 0x2f7   : > { %v1269_v45 = vsub.f32 %v1096_v18, %v1249_v44 }
 0x2f9   : > { %v1278_v46 = vmul.f32 1.442695, %v1269_v45 }
 0x2fa   : > { %v1170_v47 = vpop.f32.mrf.mxu3 }
 0x2fb   : > { %3467 = vpow2.f32 %v1278_v46 }
 0x2fc   : > { %v1240_v49 = vpop.f32.mrf.mxu2  ;;  %1263 = vmax.xlane.f32.xlu1 %v1262_v48  ;;  %v1218_v50 = vpop.f32.mrf.mxu1 }
 0x2fd   : > { %v1265_v53 = vsel %vm1056_vm1, %v1240_v49, -inf }
 0x2fe   : > { %1266 = vmax.xlane.f32.xlu2 %v1265_v53 }
 0x301   : > { %v3468_v54 = vpop.eup %3467 }
 0x302   : > { %v1295_v55 = vsel %vm1056_vm1, %v3468_v54, 0.0 }
 0x303   : > { %1296 = vadd.xlane.f32.xlu0 %v1295_v55 }
 0x304   : > { %v1242_v56 = vpop.f32.mrf.mxu2 }
 0x315   : > { %1340 = vrot.lane.b32.xlu1 %v3911_v31, %s4462_s24 }
 0x316   : > { %1404 = vrot.lane.b32.xlu2 %v3926_v51, %s4462_s24 }
 0x31e   : > { %1362 = vrot.lane.b32.xlu2 %v3920_v37, %s4462_s24 }
 0x326   : > { %1425 = vrot.lane.b32.xlu2 %v3934_v60, %s4462_s24 }
 0x32e   : > { %1488 = vrot.lane.b32.xlu2 %v3936_v61, %s4462_s24 }
 0x343   : > { %v1252_v57 = vpop.xlane.xlu2 %1251 }
 0x344   : > { %v1270_v58 = vsub.f32 %v1120_v25, %v1252_v57 }
 0x346   : > { %v1280_v59 = vmul.f32 1.442695, %v1270_v58 }
 0x348   : > { %3469 = vpow2.f32 %v1280_v59 }
 0x34e   : > { %v3990_v63 = vpop.eup %3469 }
 0x34f   : > { %v1298_v31 = vsel %vm1056_vm1, %v3990_v63, 0.0 }
 0x350   : > { %1299 = vadd.xlane.f32.xlu0 %v1298_v31 }
 0x353   : > { %v1261_v60 = vpop.xlane.xlu0 %1260 }
 0x361   : > { %v1255_v51 = vpop.xlane.xlu2 %1254 }
 0x362   : > { %v1271_v3 = vsub.f32 %v1144_v35, %v1255_v51 }
 0x364   : > { %v1282_v5 = vmul.f32 1.442695, %v1271_v3 }
 0x367   : > { %v1258_v0 = vpop.xlane.xlu1 %1257 }
 0x368   : > { %v1272_v1 = vsub.f32 %v1168_v39, %v1258_v0 }
 0x369   : > { %v1294_v37 = vpop.xlane.xlu2 %1293 }
 0x36a   : > { %v1284_v4 = vmul.f32 1.442695, %v1272_v1 }
 0x36c   : > { %3471 = vpow2.f32 %v1284_v4 }
 0x36d   : > { %3473 = vpow2.f32 %v1282_v5 }
 0x36f   : > { %v1264_v61 = vpop.xlane.xlu1 %1263 }
 0x370   : > { %v1274_v6 = vsub.f32 %v1216_v42, %v1264_v61 }
 0x371   : > { %v1267_v7 = vpop.xlane.xlu2 %1266 }
 0x372   : > { %v3472_v8 = vpop.eup %3471  ;;  %v1288_v9 = vmul.f32 1.442695, %v1274_v6  ;;  %v1275_v10 = vsub.f32 %v1240_v49, %v1267_v7  ;;  %v1517_v49 = vld [vmem:[%s4443_s7] sm:$0xf] }
 0x373   : > { %v1304_v11 = vsel %vm1056_vm1, %v3472_v8, 0.0  ;;  %v3474_v14 = vpop.eup %3473 }
 0x374   : > { %3475 = vpow2.f32 %v1288_v9  ;;  %v1290_v12 = vmul.f32 1.442695, %v1275_v10  ;;  %1305 = vadd.xlane.f32.xlu0 %v1304_v11  ;;  %v1301_v19 = vsel %vm1056_vm1, %v3474_v14, 0.0 }
 0x376   : > { %3477 = vpow2.f32 %v1290_v12  ;;  %v1297_v13 = vpop.xlane.xlu0 %1296 }
 0x377   : > { %3479 = vrcp.f32 %v1297_v13  ;;  %v1518_v13 = vld [vmem:[%s4443_s7 + $0x4] sm:$0xf] }
 0x378   : > { %3481 = vrcp.f32 %v1294_v37 }
 0x379   : > { %v1405_v15 = vpop.permute.xlu2 %1404 }
 0x37a   : > { %v3995_v16 = vpop.eup %3475  ;;  %v1410_v17 = vsel %vm1345_vm2, %v1405_v15, 0 }
 0x37b   : > { %1419 = vmatpush.bf16.msra.mxu2 %v1410_v17  ;;  %v1310_v18 = vsel %vm1056_vm1, %v3995_v16, 0.0 }
 0x37c   : > { %v4001_v21 = vpop.eup %3477  ;;  %1311 = vadd.xlane.f32.xlu2 %v1310_v18  ;;  %1302 = vadd.xlane.f32.xlu0 %v1301_v19 }
 0x37d   : > { %v3480_v25 = vpop.eup %3479  ;;  %v1313_v26 = vsel %vm1056_vm1, %v4001_v21, 0.0 }
 0x37e   : > { %1314 = vadd.xlane.f32.xlu1 %v1313_v26  ;;  %v1325_v27 = vmul.f32 %v3480_v25, %v3468_v54  ;;  %v3482_v32 = vpop.eup %3481  ;;  %v1520_v26 = vld [vmem:[%s4443_s7 + $0xc] sm:$0xf] }
 0x37f   : > { %v1324_v34 = vmul.f32 %v3482_v32, %v3972_v38  ;;  %v1273_v38 = vsub.f32 %v3967_v28, %v1261_v60  ;;  %v1524_v32 = vld [vmem:[%s4443_s7 + $0x1c] sm:$0xf] }
 0x380   : > { %v1333_v33 = vpack.c.bf16 %v1325_v27, %v1325_v27  ;;  %v1586_v27 = vsel %vm1345_vm2, %v1520_v26, 0 }
 0x381   : > { %v1363_v29 = vpop.permute.xlu2 %1362  ;;  %v1332_v40 = vpack.c.bf16 %v1324_v34, %v1324_v34  ;;  %v1286_v44 = vmul.f32 1.442695, %v1273_v38  ;;  %v1523_v34 = vld [vmem:[%s4443_s7 + $0x18] sm:$0xf] }
 0x382   : > { %v1368_v30 = vsel %vm1345_vm2, %v1363_v29, 0  ;;  %v1519_v29 = vld [vmem:[%s4443_s7 + $0x8] sm:$0xf] }
 0x383   : > { %1377 = vmatpush.bf16.msra.mxu0 %v1368_v30  ;;  %3483 = vpow2.f32 %v1286_v44  ;;  %v1567_v30 = vsel %vm1345_vm2, %v1519_v29, 0 }
 0x386   : > { %3153 = vmatmul.msk.bf16.vlgmr.msra.gmra.mxu0 %vm1056_vm1, %v1333_v33  ;;  %v1662_v33 = vsel %vm1345_vm2, %v1524_v32, 0 }
 0x387   : > { %v1341_v35 = vpop.permute.xlu1 %1340 }
 0x388   : > { %v1347_v36 = vsel %vm1345_vm2, %v1341_v35, 0  ;;  %v1643_v35 = vsel %vm1345_vm2, %v1523_v34, 0 }
 0x389   : > { %1356 = vmatpush.bf16.msrb.mxu3 %v1347_v36  ;;  %v1426_v39 = vpop.permute.xlu2 %1425  ;;  %v3484_v45 = vpop.eup %3483 }
 0x38a   : > { %v1431_v41 = vsel %vm1345_vm2, %v1426_v39, 0  ;;  %v1307_v46 = vsel %vm1056_vm1, %v3484_v45, 0.0 }
 0x38c   : > { %3152 = vmatmul.msk.bf16.vlgmr.msrb.gmra.mxu3 %vm1056_vm1, %v1332_v40  ;;  %v1522_v40 = vld [vmem:[%s4443_s7 + $0x14] sm:$0xf] }
 0x38d   : > { %1440 = vmatpush.bf16.msra.mxu3 %v1431_v41 }
 0x390   : > { %1383 = vrot.lane.b32.xlu0 %v3928_v52, %s4462_s24 }
 0x391   : > { %v1489_v42 = vpop.permute.xlu2 %1488 }
 0x392   : > { %v1494_v43 = vsel %vm1345_vm2, %v1489_v42, 0 }
 0x393   : > { %1503 = vmatpush.bf16.msrb.mxu2 %v1494_v43  ;;  %v1624_v43 = vsel %vm1345_vm2, %v1522_v40, 0 }
 0x397   : > { %1446 = vrot.lane.b32.xlu1 %v3938_v62, %s4462_s24 }
 0x39f   : > { %1467 = vrot.lane.b32.xlu1 %v3947_v2, %s4462_s24  ;;  %v1529_v2 = vsel %vm1345_vm2, %v1517_v49, 0 }
 0x3a0   : > { %1538 = vmatpush.bf16.msrb.mxu3 %v1529_v2 }
 0x3ba   : > { %1308 = vadd.xlane.f32.xlu0 %v1307_v46 }
 0x3c3   : > { %v1300_v47 = vpop.xlane.xlu0 %1299 }
 0x3e7   : > { %v1306_v52 = vpop.xlane.xlu0 %1305 }
 0x3e8   : > { %3485 = vrcp.f32 %v1306_v52 }
 0x3ee   : > { %v3486_v48 = vpop.eup %3485 }
 0x3ef   : > { %v1328_v62 = vmul.f32 %v3486_v48, %v3472_v8  ;;  %v1303_v50 = vpop.xlane.xlu0 %1302  ;;  %v1312_v37 = vpop.xlane.xlu2 %1311 }
 0x3f0   : > { %3487 = vrcp.f32 %v1303_v50 }
 0x3f1   : > { %v1336_v28 = vpack.c.bf16 %v1328_v62, %v1328_v62  ;;  %3489 = vrcp.f32 %v1300_v47  ;;  %v1315_v56 = vpop.xlane.xlu1 %1314 }
 0x3f2   : > { %3491 = vrcp.f32 %v1315_v56 }
 0x3f3   : > { %3156 = vmatmul.msk.bf16.vlgmr.msra.gmra.mxu3 %vm1056_vm1, %v1336_v28  ;;  %3493 = vrcp.f32 %v1312_v37 }
 0x3f6   : > { %v3488_v53 = vpop.eup %3487 }
 0x3f7   : > { %v1327_v54 = vmul.f32 %v3488_v53, %v3474_v14  ;;  %v3490_v57 = vpop.eup %3489  ;;  %v1548_v14 = vsel %vm1345_vm2, %v1518_v13, 0 }
 0x3f8   : > { %v1326_v58 = vmul.f32 %v3490_v57, %v3990_v63  ;;  %v3492_v59 = vpop.eup %3491 }
 0x3f9   : > { %v1335_v55 = vpack.c.bf16 %v1327_v54, %v1327_v54  ;;  %v1331_v3 = vmul.f32 %v3492_v59, %v4001_v21  ;;  %v3494_v63 = vpop.eup %3493  ;;  %v1521_v21 = vld [vmem:[%s4443_s7 + $0x10] sm:$0xf] }
 0x3fa   : > { %v1334_v1 = vpack.c.bf16 %v1326_v58, %v1326_v58  ;;  %v1330_v8 = vmul.f32 %v3494_v63, %v3995_v16  ;;  %v1605_v25 = vsel %vm1345_vm2, %v1521_v21, 0 }
 0x3fb   : > { %3155 = vmatmul.msk.bf16.vlgmr.msra.gmra.mxu2 %vm1056_vm1, %v1335_v55  ;;  %v1339_v4 = vpack.c.bf16 %v1331_v3, %v1331_v3  ;;  %1614 = vmatpush.bf16.msra.mxu3 %v1605_v25 }
 0x3fc   : > { %v1338_v11 = vpack.c.bf16 %v1330_v8, %v1330_v8  ;;  %1595 = vmatpush.bf16.msra.mxu2 %v1586_v27 }
 0x402   : > { %v1384_v31 = vpop.permute.xlu0 %1383 }
 0x403   : > { %v1389_v51 = vsel %vm1345_vm2, %v1384_v31, 0  ;;  %v1379_v0 = vpop.f32.mrf.mxu0 }
 0x404   : > { %1398 = vmatpush.bf16.msrb.mxu1 %v1389_v51  ;;  %v1510_v19 = vpack.c.bf16 %v1379_v0, %v1379_v0 }
 0x407   : > { %3154 = vmatmul.msk.bf16.vlgmr.msrb.gmra.mxu1 %vm1056_vm1, %v1334_v1 }
 0x409   : > { %v1447_v60 = vpop.permute.xlu1 %1446 }
 0x40a   : > { %v1452_v5 = vsel %vm1345_vm2, %v1447_v60, 0  ;;  %v3450_v60 = vld [vmem:[%s4444_s8] ss:$0 sm:$0xff] }
 0x40b   : > { %v1381_v61 = vpop.f32.mrf.mxu0  ;;  %1461 = vmatpush.bf16.msrb.mxu0 %v1452_v5  ;;  %3159 = vmatmul.msk.bf16.vlgmr.msrb.gmra.mxu2 %vm1056_vm1, %v1339_v4 }
 0x40c   : > { %1671 = vmatpush.bf16.msrb.mxu2 %v1662_v33 }
 0x40f   : > { %v1358_v6 = vpop.f32.mrf.mxu3  ;;  %1557 = vmatpush.bf16.msra.mxu0 %v1548_v14 }
 0x410   : > { %v1509_v7 = vpack.c.bf16 %v1358_v6, %v1358_v6 }
 0x411   : > { %v1468_v9 = vpop.permute.xlu1 %1467 }
 0x412   : > { %v1473_v10 = vsel %vm1345_vm2, %v1468_v9, 0  ;;  %3160 = vmatmul.msk.bf16.vlgmr.msrb.gmra.mxu3 %vm1056_vm1, %v1509_v7 }
 0x413   : > { %1482 = vmatpush.bf16.msra.mxu1 %v1473_v10 }
 0x417   : > { %v1360_v12 = vpop.f32.mrf.mxu3  ;;  %3158 = vmatmul.msk.bf16.vlgmr.msra.gmra.mxu1 %vm1056_vm1, %v1338_v11 }
 0x418   : > { %1576 = vmatpush.bf16.msrb.mxu1 %v1567_v30 }
 0x41c   : > { %1652 = vmatpush.bf16.msra.mxu1 %v1643_v35 }
 0x42d   : > { %v1309_v15 = vpop.xlane.xlu0 %1308 }
 0x42e   : > { %3495 = vrcp.f32 %v1309_v15 }
 0x434   : > { %v3496_v16 = vpop.eup %3495 }
 0x435   : > { %v1329_v17 = vmul.f32 %v3496_v16, %v3484_v45 }
 0x437   : > { %v1337_v18 = vpack.c.bf16 %v1329_v17, %v1329_v17 }
 0x439   : > { %3157 = vmatmul.msk.bf16.vlgmr.msrb.gmra.mxu0 %vm1056_vm1, %v1337_v18 }
 0x43a   : > { %1633 = vmatpush.bf16.msrb.mxu0 %v1624_v43  ;;  %v3371_v43 = vld [vmem:[%s4447_s11 + $0x8] sm:$0xff] }
 0x43b   : > { %1784 = vmatpush.bf16.msrb.mxu3 %v3371_v43  ;;  %v3381_v43 = vld [vmem:[%s4441_s5 + $0x18] sm:$0xff] }
 0x449   : > { %3161 = vmatmul.msk.bf16.vlgmr.msra.gmra.mxu0 %vm1056_vm1, %v1510_v19  ;;  %v3617_v19 = vmov 32.0  }
 0x44a   : > { %3497 = vrcp.f32 %v3617_v19  ;;  %v3454_v19 = vld [vmem:[%s4450_s14] ss:$0 sm:$0xff] }
 0x450   : > { %v3498_v20 = vpop.eup %3497 }
 0x451   : > { %vm1704_vm3 = vweird.f32 %v3498_v20 }
 0x476   : > { %v1442_v36 = vpop.f32.mrf.mxu3 }
 0x477   : > { %v1513_v39 = vpack.c.bf16 %v1442_v36, %v1442_v36 }
 0x479   : > { %3164 = vmatmul.msk.bf16.vlgmr.msra.gmra.mxu3 %vm1056_vm1, %v1513_v39 }
 0x47e   : > { %v1421_v41 = vpop.f32.mrf.mxu2  ;;  %v1444_v42 = vpop.f32.mrf.mxu3 }
 0x47f   : > { %v1512_v38 = vpack.c.bf16 %v1421_v41, %v1421_v41 }
 0x481   : > { %3163 = vmatmul.msk.bf16.vlgmr.msra.gmra.mxu2 %vm1056_vm1, %v1512_v38 }
 0x484   : > { %v1400_v44 = vpop.f32.mrf.mxu1 }
 0x485   : > { %v1511_v45 = vpack.c.bf16 %v1400_v44, %v1400_v44  ;;  %v3370_v44 = vld [vmem:[%s4447_s11] sm:$0xff] }
 0x486   : > { %v1423_v46 = vpop.f32.mrf.mxu2  ;;  %1785 = vmatpush.bf16.msrb.mxu3 %v3370_v44 }
 0x487   : > { %3162 = vmatmul.msk.bf16.vlgmr.msrb.gmra.mxu1 %vm1056_vm1, %v1511_v45  ;;  %v3379_v46 = vld [vmem:[%s4449_s13 + $0x38] sm:$0xff] }
 0x488   : > { %1863 = vmatpush.bf16.msra.mxu0 %v3379_v46  ;;  %1967 = vmatpush.bf16.msrb.mxu1 %v3381_v43  ;;  %v3380_v46 = vld [vmem:[%s4441_s5 + $0x10] sm:$0xff] }
 0x48c   : > { %v1402_v47 = vpop.f32.mrf.mxu1  ;;  %1968 = vmatpush.bf16.msrb.mxu1 %v3380_v46 }
 0x48e   : > { %v1505_v52 = vpop.f32.mrf.mxu2 }
 0x48f   : > { %v1516_v48 = vpack.c.bf16 %v1505_v52, %v1505_v52 }
 0x491   : > { %3167 = vmatmul.msk.bf16.vlgmr.msrb.gmra.mxu2 %vm1056_vm1, %v1516_v48 }
 0x494   : > { %v1484_v49 = vpop.f32.mrf.mxu1 }
 0x495   : > { %v1515_v62 = vpack.c.bf16 %v1484_v49, %v1484_v49  ;;  %v1540_v50 = vpop.f32.mrf.mxu3  ;;  %v3378_v49 = vld [vmem:[%s4449_s13 + $0x30] sm:$0xff] }
 0x496   : > { %v1507_v2 = vpop.f32.mrf.mxu2  ;;  %1864 = vmatpush.bf16.msra.mxu0 %v3378_v49 }
 0x497   : > { %3166 = vmatmul.msk.bf16.vlgmr.msra.gmra.mxu1 %vm1056_vm1, %v1515_v62  ;;  %v3377_v2 = vld [vmem:[%s4449_s13 + $0x28] sm:$0xff] }
 0x49a   : > { %1865 = vmatpush.bf16.msra.mxu0 %v3377_v2 }
 0x49c   : > { %v1486_v28 = vpop.f32.mrf.mxu1 }
 0x49d   : > { %v1542_v53 = vpop.f32.mrf.mxu3 }
 0x49e   : > { %v3376_v53 = vld [vmem:[%s4449_s13 + $0x20] sm:$0xff] }
 0x49f   : > { %1866 = vmatpush.bf16.msra.mxu0 %v3376_v53 }
 0x4b6   : > { %v1463_v54 = vpop.f32.mrf.mxu0 }
 0x4b7   : > { %v1514_v55 = vpack.c.bf16 %v1463_v54, %v1463_v54 }
 0x4b9   : > { %3165 = vmatmul.msk.bf16.vlgmr.msrb.gmra.mxu0 %vm1056_vm1, %v1514_v55 }
 0x4be   : > { %v1465_v56 = vpop.f32.mrf.mxu0 }
 0x4c6   : > { %v1559_v57 = vpop.f32.mrf.mxu0 }
 0x4ce   : > { %v1561_v58 = vpop.f32.mrf.mxu0 }
 0x4fc   : > { %v1616_v59 = vpop.f32.mrf.mxu3 }
 0x504   : > { %v1578_v31 = vpop.f32.mrf.mxu1  ;;  %v1597_v51 = vpop.f32.mrf.mxu2 }
 0x505   : > { %v1618_v0 = vpop.f32.mrf.mxu3  ;;  %v1677_v3 = vadd.f32 %v1578_v31, %v1540_v50  ;;  %v1678_v11 = vadd.f32 %v1597_v51, %v1559_v57  ;;  %v3451_v51 = vld [vmem:[%s4445_s9] ss:$0 sm:$0xff] }
 0x507   : > { %v1679_v4 = vadd.f32 %v1677_v3, %v1616_v59  ;;  %v3452_v3 = vld [vmem:[%s4446_s10] ss:$0 sm:$0xff] }
 0x50c   : > { %v1580_v1 = vpop.f32.mrf.mxu1  ;;  %v1599_v37 = vpop.f32.mrf.mxu2 }
 0x514   : > { %v1654_v5 = vpop.f32.mrf.mxu1  ;;  %v1673_v61 = vpop.f32.mrf.mxu2 }
 0x515   : > { %v1681_v63 = vadd.f32 %v1679_v4, %v1654_v5 }
 0x517   : > { %v1687_v6 = vadd.f32 %v3450_v60, %v1681_v63 }
 0x519   : > { %v1689_v7 = vadd.f32 %v1687_v6, %v982_v23  ;;  %v1700_v23 = vmul.f32 32.0, %v3498_v20 }
 0x51b   : > { %v1693_v8 = vsel %vm1005_vm0, %v1689_v7, 0.0  ;;  %v1701_v21 = vsub.f32 1.0, %v1700_v23 }
 0x51c   : > { %v1675_v9 = vpop.f32.mrf.mxu2  ;;  %1694 = vadd.xlane.f32.xlu0 %v1693_v8  ;;  %v1656_v10 = vpop.f32.mrf.mxu1  ;;  %v3374_v8 = vld [vmem:[%s4449_s13 + $0x10] sm:$0xff] }
 0x51d   : > { %v1702_v25 = vmul.f32 %v3498_v20, %v1701_v21  ;;  %v3373_v9 = vld [vmem:[%s4449_s13 + $0x8] sm:$0xff]  ;;  %v3372_v10 = vld [vmem:[%s4449_s13] sm:$0xff] }
 0x51f   : > { %v1703_v26 = vadd.f32 %v3498_v20, %v1702_v25 }
 0x521   : > { %v4081_v27 = vsel %vm1704_vm3, %v3498_v20, %v1703_v26 }
 0x536   : > { %v1635_v12 = vpop.f32.mrf.mxu0 }
 0x537   : > { %v1680_v13 = vadd.f32 %v1678_v11, %v1635_v12  ;;  %v3453_v12 = vld [vmem:[%s4448_s12] ss:$0 sm:$0xff] }
 0x539   : > { %v1682_v14 = vadd.f32 %v1680_v13, %v1673_v61 }
 0x53b   : > { %v1688_v15 = vadd.f32 %v3450_v60, %v1682_v14 }
 0x53d   : > { %v1690_v16 = vadd.f32 %v1688_v15, %v983_v24 }
 0x53e   : > { %v1637_v17 = vpop.f32.mrf.mxu0 }
 0x53f   : > { %v1696_v18 = vsel %vm1005_vm0, %v1690_v16, 0.0 }
 0x540   : > { %1697 = vadd.xlane.f32.xlu2 %v1696_v18 }
 0x58f   : > { %v1695_v29 = vpop.xlane.xlu0 %1694 }
 0x590   : > { %v1706_v30 = vmul.f32 %v4081_v27, %v1695_v29 }
 0x592   : > { %v1708_v32 = vsub.f32 %v1689_v7, %v1706_v30  ;;  %v3375_v7 = vld [vmem:[%s4449_s13 + $0x18] sm:$0xff] }
 0x593   : > { %1867 = vmatpush.bf16.msra.mxu0 %v3375_v7 }
 0x594   : > { %v1710_v22 = vmul.f32 %v1708_v32, %v1708_v32 }
 0x596   : > { %v1712_v24 = vsel %vm1005_vm0, %v1710_v22, 0.0 }
 0x597   : > { %1713 = vadd.xlane.f32.xlu1 %v1712_v24  ;;  %1868 = vmatpush.bf16.msra.mxu0 %v3374_v8 }
 0x59b   : > { %1869 = vmatpush.bf16.msra.mxu0 %v3373_v9 }
 0x59f   : > { %1870 = vmatpush.bf16.msra.mxu0 %v3372_v10 }
 0x5b3   : > { %v1698_v33 = vpop.xlane.xlu2 %1697 }
 0x5b4   : > { %v1707_v34 = vmul.f32 %v4081_v27, %v1698_v33 }
 0x5b6   : > { %v1709_v35 = vsub.f32 %v1690_v16, %v1707_v34 }
 0x5b8   : > { %v1711_v36 = vmul.f32 %v1709_v35, %v1709_v35 }
 0x5ba   : > { %v1715_v39 = vsel %vm1005_vm0, %v1711_v36, 0.0 }
 0x5bb   : > { %1716 = vadd.xlane.f32.xlu0 %v1715_v39 }
 0x60a   : > { %v1714_v40 = vpop.xlane.xlu1 %1713 }
 0x60b   : > { %v1718_v41 = vmul.f32 %v1714_v40, %v4081_v27 }
 0x60d   : > { %v1720_v42 = vadd.f32 1e-05, %v1718_v41 }
 0x60f   : > { %3499 = vrsqrt.f32 %v1720_v42  ;;  %vm1728_vm5 = vweird.f32 %v1720_v42 }
 0x615   : > { %v3500_v38 = vpop.eup %3499 }
 0x616   : > { %v1723_v45 = vmul.f32 %v3500_v38, %v1720_v42  ;;  %vm1729_vm4 = vweird.f32 %v3500_v38 }
 0x617   : > { %vm1730_vm6 = vmor %vm1728_vm5, %vm1729_vm4 }
 0x618   : > { %v1724_v47 = vmul.f32 %v3500_v38, %v1723_v45 }
 0x61a   : > { %v1725_v50 = vmul.f32 0.5, %v1724_v47 }
 0x61c   : > { %v1726_v28 = vsub.f32 1.5, %v1725_v50 }
 0x61e   : > { %v1727_v55 = vmul.f32 %v3500_v38, %v1726_v28 }
 0x620   : > { %v1731_v58 = vsel %vm1730_vm6, %v3500_v38, %v1727_v55 }
 0x621   : > { %v1742_v0 = vmul.f32 %v1731_v58, %v1708_v32 }
 0x623   : > { %v1747_v4 = vmul.f32 %v3451_v51, %v1742_v0 }
 0x625   : > { %v1752_v61 = vadd.f32 %v3452_v3, %v1747_v4 }
 0x62e   : > { %v1717_v52 = vpop.xlane.xlu0 %1716 }
 0x62f   : > { %v1719_v48 = vmul.f32 %v1717_v52, %v4081_v27 }
 0x631   : > { %v1721_v62 = vadd.f32 1e-05, %v1719_v48 }
 0x633   : > { %3501 = vrsqrt.f32 %v1721_v62  ;;  %vm1738_vm8 = vweird.f32 %v1721_v62 }
 0x639   : > { %v3502_v54 = vpop.eup %3501 }
 0x63a   : > { %v1733_v56 = vmul.f32 %v3502_v54, %v1721_v62  ;;  %vm1739_vm7 = vweird.f32 %v3502_v54 }
 0x63b   : > { %vm1740_vm9 = vmor %vm1738_vm8, %vm1739_vm7 }
 0x63c   : > { %v1734_v57 = vmul.f32 %v3502_v54, %v1733_v56 }
 0x63e   : > { %v1735_v59 = vmul.f32 0.5, %v1734_v57 }
 0x640   : > { %v1736_v31 = vsub.f32 1.5, %v1735_v59 }
 0x642   : > { %v1737_v1 = vmul.f32 %v3502_v54, %v1736_v31  ;;  %v3455_v31 = vld [vmem:[%s4451_s15] ss:$0 sm:$0xff] }
 0x644   : > { %v1741_v37 = vsel %vm1740_vm9, %v3502_v54, %v1737_v1 }
 0x645   : > { %v1743_v60 = vmul.f32 %v1741_v37, %v1709_v35  ;;  %v3456_v37 = vld [vmem:[%s4452_s16] ss:$0 sm:$0xff] }
 0x647   : > { %v1748_v5 = vmul.f32 %v3451_v51, %v1743_v60 }
 0x649   : > { %v1753_v63 = vadd.f32 %v3452_v3, %v1748_v5 }
 0x64b   : > { %v1754_v6 = vpack.c.bf16 %v1753_v63, %v1752_v61 }
 0x64d   : > { %3176 = vmatmul.msk.bf16.vlgmr.msrb.gmra.mxu3 %vm1005_vm0, %v1754_v6  ;;  %v3457_v6 = vld [vmem:[%s4442_s6 + $0x1] ss:$0 sm:$0xff] }
 0x6d0   : > { %v1787_v11 = vpop.f32.mrf.mxu3 }
 0x6d1   : > { %v1788_v13 = vadd.f32 %v3453_v12, %v1787_v11 }
 0x6d3   : > { %v1792_v16 = vmax.f32 %v1788_v13, 0.0 }
 0x6d8   : > { %v1789_v14 = vpop.f32.mrf.mxu3 }
 0x6d9   : > { %v1790_v15 = vadd.f32 %v3453_v12, %v1789_v14 }
 0x6db   : > { %v1793_v17 = vmax.f32 %v1790_v15, 0.0 }
 0x6dd   : > { %v1794_v18 = vpack.c.bf16 %v1793_v17, %v1792_v16 }
 0x6df   : > { %1871 = vmatmul.bf16.vlgmr.msra.gmra.mxu0 %v1794_v18 }
 0x75c   : > { %v1872_v20 = vpop.f32.mrf.mxu0 }
 0x75d   : > { %v1873_v23 = vadd.f32 %v3454_v19, %v1872_v20 }
 0x75f   : > { %v1877_v21 = vadd.f32 %v1873_v23, %v1752_v61 }
 0x761   : > { %v1881_v25 = vsel %vm1005_vm0, %v1877_v21, 0.0 }
 0x762   : > { %1882 = vadd.xlane.f32.xlu2 %v1881_v25 }
 0x764   : > { %v1874_v26 = vpop.f32.mrf.mxu0 }
 0x765   : > { %v1875_v29 = vadd.f32 %v3454_v19, %v1874_v26 }
 0x767   : > { %v1878_v30 = vadd.f32 %v1875_v29, %v1753_v63 }
 0x769   : > { %v1884_v32 = vsel %vm1005_vm0, %v1878_v30, 0.0 }
 0x76a   : > { %1885 = vadd.xlane.f32.xlu0 %v1884_v32 }
 0x7d5   : > { %v1883_v22 = vpop.xlane.xlu2 %1882 }
 0x7d6   : > { %v1887_v24 = vmul.f32 %v1883_v22, %v4081_v27 }
 0x7d8   : > { %v1889_v33 = vsub.f32 %v1877_v21, %v1887_v24 }
 0x7da   : > { %v1891_v34 = vmul.f32 %v1889_v33, %v1889_v33 }
 0x7dc   : > { %v1893_v35 = vsel %vm1005_vm0, %v1891_v34, 0.0 }
 0x7dd   : > { %v1886_v36 = vpop.xlane.xlu0 %1885  ;;  %1894 = vadd.xlane.f32.xlu2 %v1893_v35 }
 0x7de   : > { %v1888_v39 = vmul.f32 %v1886_v36, %v4081_v27 }
 0x7e0   : > { %v1890_v40 = vsub.f32 %v1878_v30, %v1888_v39 }
 0x7e2   : > { %v1892_v41 = vmul.f32 %v1890_v40, %v1890_v40 }
 0x7e4   : > { %v1896_v42 = vsel %vm1005_vm0, %v1892_v41, 0.0 }
 0x7e5   : > { %1897 = vadd.xlane.f32.xlu0 %v1896_v42 }
 0x850   : > { %v1895_v38 = vpop.xlane.xlu2 %1894 }
 0x851   : > { %v1899_v44 = vmul.f32 %v1895_v38, %v4081_v27 }
 0x853   : > { %v1901_v45 = vadd.f32 1e-05, %v1899_v44 }
 0x855   : > { %3503 = vrsqrt.f32 %v1901_v45  ;;  %vm1909_vm11 = vweird.f32 %v1901_v45 }
 0x858   : > { %v1898_v47 = vpop.xlane.xlu0 %1897 }
 0x859   : > { %v1900_v52 = vmul.f32 %v1898_v47, %v4081_v27 }
 0x85b   : > { %v3504_v48 = vpop.eup %3503  ;;  %v1902_v49 = vadd.f32 1e-05, %v1900_v52 }
 0x85c   : > { %v1904_v62 = vmul.f32 %v3504_v48, %v1901_v45  ;;  %vm1910_vm10 = vweird.f32 %v3504_v48 }
 0x85d   : > { %3505 = vrsqrt.f32 %v1902_v49  ;;  %vm1911_vm12 = vmor %vm1909_vm11, %vm1910_vm10  ;;  %vm1919_vm14 = vweird.f32 %v1902_v49 }
 0x85e   : > { %v1905_v50 = vmul.f32 %v3504_v48, %v1904_v62 }
 0x860   : > { %v1906_v2 = vmul.f32 0.5, %v1905_v50 }
 0x862   : > { %v1907_v28 = vsub.f32 1.5, %v1906_v2 }
 0x863   : > { %v3506_v53 = vpop.eup %3505 }
 0x864   : > { %v1908_v54 = vmul.f32 %v3504_v48, %v1907_v28  ;;  %v1914_v55 = vmul.f32 %v3506_v53, %v1902_v49  ;;  %vm1920_vm13 = vweird.f32 %v3506_v53 }
 0x865   : > { %vm1921_vm15 = vmor %vm1919_vm14, %vm1920_vm13 }
 0x866   : > { %v1915_v56 = vmul.f32 %v3506_v53, %v1914_v55  ;;  %v1912_v57 = vsel %vm1911_vm12, %v3504_v48, %v1908_v54 }
 0x867   : > { %v1923_v51 = vmul.f32 %v1912_v57, %v1889_v33 }
 0x868   : > { %v1916_v58 = vmul.f32 0.5, %v1915_v56 }
 0x869   : > { %v1928_v3 = vmul.f32 %v3455_v31, %v1923_v51 }
 0x86a   : > { %v1917_v59 = vsub.f32 1.5, %v1916_v58 }
 0x86b   : > { %v4152_v5 = vadd.f32 %v3456_v37, %v1928_v3 }
 0x86c   : > { %v1918_v0 = vmul.f32 %v3506_v53, %v1917_v59 }
 0x86e   : > { %v1922_v1 = vsel %vm1921_vm15, %v3506_v53, %v1918_v0 }
 0x86f   : > { %v1924_v4 = vmul.f32 %v1922_v1, %v1890_v40 }
 0x871   : > { %v1929_v60 = vmul.f32 %v3455_v31, %v1924_v4 }
 0x873   : > { %v4154_v61 = vadd.f32 %v3456_v37, %v1929_v60 }
 0x875   : > { %v1935_v63 = vpack.c.bf16 %v4154_v61, %v4152_v5 }
 0x877   : > { %3222 = vmatmul.msk.bf16.vlgmr.msrb.gmra.mxu1 %vm1005_vm0, %v1935_v63 }
 0x8f4   : > { %v1970_v7 = vpop.f32.mrf.mxu1 }
 0x8f5   : > { %v1971_v8 = vadd.f32 %v3457_v6, %v1970_v7 }
 0x8f7   : > { %1983 = vrot.lane.b32.xlu0 %v1971_v8, %s3615_s0  ;;  %v1995_v9 = vpack.c.bf16 %v1971_v8, %v1971_v8 }
 0x8f9   : > { %v2004_v10 = vunpack.c.l.b16 %v1995_v9 }
 0x8fb   : > { %v2005_v13 = vpack.c.b16 %v2004_v10, %v2004_v10 }
 0x8fc   : > { %v1972_v11 = vpop.f32.mrf.mxu1 }
 0x8fd   : > { %v1973_v12 = vadd.f32 %v3457_v6, %v1972_v11 }
 0x8ff   : > { %1991 = vrot.lane.b32.xlu1 %v1973_v12, %s3613_s1  ;;  %1979 = vrot.lane.b32.xlu2 %v1973_v12, %s3614_s26  ;;  %v1996_v14 = vpack.c.bf16 %v1973_v12, %v1973_v12 }
 0x900   : > { %2006 = vrot.lane.b32.xlu0 %v2005_v13, %s3612_s18 }
 0x901   : > { %v2028_v15 = vunpack.c.l.b16 %v1996_v14 }
 0x903   : > { %v4169_v16 = vpack.c.b16 %v2028_v15, %v2028_v15 }
 0x907   : > { %1977 = vrot.lane.b32.xlu2 %v1971_v8, %s3614_s26 }
 0x908   : > { %1989 = vrot.lane.b32.xlu0 %v1971_v8, %s3613_s1  ;;  %s4481_s1 = smov 64  }
 0x90f   : > { %1985 = vrot.lane.b32.xlu2 %v1973_v12, %s3615_s0 }
 0x917   : > { %2030 = vrot.lane.b32.xlu2 %v4169_v16, %s3612_s18 }
 0x959   : > { %v1980_v17 = vpop.permute.xlu2 %1979 }
 0x95a   : > { %v1998_v18 = vpack.c.bf16 %v1980_v17, %v1980_v17 }
 0x95c   : > { %v2076_v19 = vunpack.c.l.b16 %v1998_v18 }
 0x95e   : > { %v4173_v20 = vpack.c.b16 %v2076_v19, %v2076_v19 }
 0x960   : > { %2078 = vrot.lane.b32.xlu0 %v4173_v20, %s3612_s18 }
 0x961   : > { %v1978_v23 = vpop.permute.xlu2 %1977 }
 0x962   : > { %v1997_v21 = vpack.c.bf16 %v1978_v23, %v1978_v23 }
 0x964   : > { %v2052_v25 = vunpack.c.l.b16 %v1997_v21 }
 0x966   : > { %v4177_v26 = vpack.c.b16 %v2052_v25, %v2052_v25 }
 0x968   : > { %2054 = vrot.lane.b32.xlu0 %v4177_v26, %s3612_s18 }
 0x969   : > { %v1986_v29 = vpop.permute.xlu2 %1985  ;;  %v1984_v30 = vpop.permute.xlu0 %1983 }
 0x96a   : > { %v1999_v32 = vpack.c.bf16 %v1984_v30, %v1984_v30  ;;  %v2000_v24 = vpack.c.bf16 %v1986_v29, %v1986_v29 }
 0x96c   : > { %v2100_v22 = vunpack.c.l.b16 %v1999_v32  ;;  %v2124_v36 = vunpack.c.l.b16 %v2000_v24 }
 0x96e   : > { %v4181_v33 = vpack.c.b16 %v2100_v22, %v2100_v22  ;;  %v4187_v38 = vpack.c.b16 %v2124_v36, %v2124_v36 }
 0x970   : > { %2102 = vrot.lane.b32.xlu1 %v4181_v33, %s3612_s18 }
 0x971   : > { %v1992_v34 = vpop.permute.xlu1 %1991  ;;  %v2031_v35 = vpop.permute.xlu2 %2030 }
 0x972   : > { %v2002_v39 = vpack.c.bf16 %v1992_v34, %v1992_v34  ;;  %v2036_v40 = vsel %vm1056_vm1, %v2031_v35, 0  ;;  %v2007_v41 = vpop.permute.xlu0 %2006 }
 0x973   : > { %v2012_v42 = vsel %vm1056_vm1, %v2007_v41, 0  ;;  %2045 = vmatpush.bf16.xpose.msra.mxu3 %v2036_v40 }
 0x974   : > { %v2172_v43 = vunpack.c.l.b16 %v2002_v39  ;;  %2021 = vmatpush.bf16.xpose.msra.mxu2 %v2012_v42 }
 0x976   : > { %v4189_v44 = vpack.c.b16 %v2172_v43, %v2172_v43 }
 0x978   : > { %2174 = vrot.lane.b32.xlu2 %v4189_v44, %s3612_s18  ;;  %2126 = vrot.lane.b32.xlu1 %v4187_v38, %s3612_s18 }
 0x97a   : > { %v1990_v45 = vpop.permute.xlu0 %1989  ;;  %3224 = vmatmul.msk.bf16.vlgmr.msra.gmra.mxu3 %vm1056_vm1, %v1996_v14 }
 0x97b   : > { %v2001_v46 = vpack.c.bf16 %v1990_v45, %v1990_v45  ;;  %3223 = vmatmul.msk.bf16.vlgmr.msra.gmra.mxu2 %vm1056_vm1, %v1995_v9 }
 0x97d   : > { %v2148_v47 = vunpack.c.l.b16 %v2001_v46 }
 0x97f   : > { %v4197_v52 = vpack.c.b16 %v2148_v47, %v2148_v47 }
 0x980   : > { %2291 = vrot.lane.b32.xlu1 %v2005_v13, %s4481_s1 }
 0x981   : > { %2150 = vrot.lane.b32.xlu2 %v4197_v52, %s3612_s18  ;;  %s3392_s18 = sshll.u32 %s3731_s28, 4  ;;  %s2891_s28 = scalar_lea.sflag [#allocation4], %s540_s21 }
 0x982   : > { %s2902_s20 = scalar_lea.hbm %s4453_s17, %s3392_s18  ;;  %s3567_s18 = scalar_lea.hbm %s4453_s17, 32 }
 0x983   : > { %s2905_s30 = sshll.u32 %s2902_s20, 4  ;;  %s2906_s30 = int_to_ptr.hbm [resolvable:$true] %s2905_s30 }
 0x984   : > { %s3561_s22 = sshra.s32 %s2906_s30, 4  ;;  %s3562_s22 = int_to_ptr.hbm [resolvable:$true] %s3561_s22 }
 0x985   : > { %s3563_s23 = scalar_lea.hbm %s3562_s22, 16  ;;  %p3568_p0 = scmp.lt.s32.totalorder %s3562_s22, %s4453_s17 }
 0x986   : > { %p3564_p11 = scmp.ne.s32.totalorder %s3562_s22, %s3563_s23  ;;  %p3569_p1 = scmp.lt.s32.totalorder %s3567_s18, %s3563_s23 }
 0x988   : > { %p3565_p12 = pnand %p3564_p11, %p3748_p5  ;;  %p3570_p2 = por %p3569_p1, %p3568_p0 }
 0x98a   : > { %p3566_p13 = pneg %p3565_p12 }
 0x98c   : > { %p3571_p3 = pnand %p3570_p2, %p3566_p13 }
 0x9d2   : > { %v2175_v48 = vpop.permute.xlu2 %2174  ;;  %v2079_v49 = vpop.permute.xlu0 %2078 }
 0x9d3   : > { %v2180_v62 = vsel %vm1056_vm1, %v2175_v48, 0  ;;  %v2084_v50 = vsel %vm1056_vm1, %v2079_v49, 0 }
 0x9d4   : > { %2093 = vmatpush.bf16.xpose.msrb.mxu2 %v2084_v50 }
 0x9da   : > { %v2055_v2 = vpop.permute.xlu0 %2054 }
 0x9db   : > { %v2151_v28 = vpop.permute.xlu2 %2150  ;;  %v2060_v53 = vsel %vm1056_vm1, %v2055_v2, 0  ;;  %3226 = vmatmul.msk.bf16.vlgmr.msrb.gmra.mxu2 %vm1056_vm1, %v1998_v18 }
 0x9dc   : > { %2189 = vmatpush.bf16.xpose.msra.mxu2 %v2180_v62  ;;  %v2156_v54 = vsel %vm1056_vm1, %v2151_v28, 0  ;;  %2069 = vmatpush.bf16.xpose.msra.mxu1 %v2060_v53 }
 0x9e2   : > { %v2103_v55 = vpop.permute.xlu1 %2102 }
 0x9e3   : > { %v2108_v56 = vsel %vm1056_vm1, %v2103_v55, 0  ;;  %3225 = vmatmul.msk.bf16.vlgmr.msra.gmra.mxu1 %vm1056_vm1, %v1997_v21 }
 0x9e4   : > { %2165 = vmatpush.bf16.xpose.msrb.mxu1 %v2156_v54  ;;  %2117 = vmatpush.bf16.xpose.msrb.mxu3 %v2108_v56 }
 0x9ea   : > { %v2127_v57 = vpop.permute.xlu1 %2126 }
 0x9eb   : > { %v2132_v58 = vsel %vm1056_vm1, %v2127_v57, 0  ;;  %3227 = vmatmul.msk.bf16.vlgmr.msrb.gmra.mxu3 %vm1056_vm1, %v1999_v32  ;;  %3230 = vmatmul.msk.bf16.vlgmr.msra.gmra.mxu2 %vm1056_vm1, %v2002_v39 }
 0x9ec   : > { %2141 = vmatpush.bf16.xpose.msrb.mxu0 %v2132_v58 }
 0x9f2   : > { %v2292_v59 = vpop.permute.xlu1 %2291 }
 0x9f3   : > { %v2297_v31 = vsel %vm1345_vm2, %v2292_v59, 0  ;;  %3228 = vmatmul.msk.bf16.vlgmr.msrb.gmra.mxu0 %vm1056_vm1, %v2000_v24  ;;  %3229 = vmatmul.msk.bf16.vlgmr.msrb.gmra.mxu1 %vm1056_vm1, %v2001_v46 }
 0x9f4   : > { %2306 = vmatpush.bf16.msra.mxu3 %v2297_v31 }
 0x9fd   : > { %v2047_v51 = vpop.f32.mrf.mxu3 }
 0x9fe   : > { %v2023_v0 = vpop.f32.mrf.mxu2  ;;  %v2198_v1 = vsel %vm1056_vm1, %v2047_v51, -inf }
 0x9ff   : > { %v2195_v37 = vsel %vm1056_vm1, %v2023_v0, -inf  ;;  %2199 = vmax.xlane.f32.xlu2 %v2198_v1 }
 0xa00   : > { %2196 = vmax.xlane.f32.xlu0 %v2195_v37 }
 0xa05   : > { %v2049_v3 = vpop.f32.mrf.mxu3 }
 0xa06   : > { %v2025_v4 = vpop.f32.mrf.mxu2 }
 0xa5e   : > { %v4217_v60 = vpop.f32.mrf.mxu2 }
 0xa5f   : > { %v2204_v30 = vsel %vm1056_vm1, %v4217_v60, -inf }
 0xa60   : > { %v2071_v63 = vpop.f32.mrf.mxu1 }
 0xa61   : > { %v2201_v6 = vsel %vm1056_vm1, %v2071_v63, -inf }
 0xa62   : > { %2202 = vmax.xlane.f32.xlu0 %v2201_v6 }
 0xa66   : > { %v2097_v7 = vpop.f32.mrf.mxu2 }
 0xa68   : > { %v2073_v8 = vpop.f32.mrf.mxu1 }
 0xa6e   : > { %v2119_v9 = vpop.f32.mrf.mxu3  ;;  %v4220_v10 = vpop.f32.mrf.mxu2 }
 0xa6f   : > { %v2207_v11 = vsel %vm1056_vm1, %v2119_v9, -inf  ;;  %v2216_v40 = vsel %vm1056_vm1, %v4220_v10, -inf }
 0xa70   : > { %v2143_v12 = vpop.f32.mrf.mxu0  ;;  %2208 = vmax.xlane.f32.xlu1 %v2207_v11  ;;  %v2167_v13 = vpop.f32.mrf.mxu1 }
 0xa71   : > { %v2210_v14 = vsel %vm1056_vm1, %v2143_v12, -inf  ;;  %v2213_v39 = vsel %vm1056_vm1, %v2167_v13, -inf }
 0xa72   : > { %v2200_v15 = vpop.xlane.xlu2 %2199  ;;  %2211 = vmax.xlane.f32.xlu0 %v2210_v14 }
 0xa73   : > { %v2220_v17 = vsub.f32 %v2047_v51, %v2200_v15  ;;  %v2197_v18 = vpop.xlane.xlu0 %2196 }
 0xa74   : > { %v2219_v19 = vsub.f32 %v2023_v0, %v2197_v18 }
 0xa75   : > { %v2229_v23 = vmul.f32 1.442695, %v2220_v17 }
 0xa76   : > { %v2227_v21 = vmul.f32 1.442695, %v2219_v19  ;;  %v2121_v25 = vpop.f32.mrf.mxu3  ;;  %v2193_v29 = vpop.f32.mrf.mxu2 }
 0xa77   : > { %3507 = vpow2.f32 %v2229_v23 }
 0xa78   : > { %3509 = vpow2.f32 %v2227_v21  ;;  %v2145_v32 = vpop.f32.mrf.mxu0  ;;  %2205 = vmax.xlane.f32.xlu1 %v2204_v30  ;;  %v2169_v22 = vpop.f32.mrf.mxu1 }
 0xa79   : > { %v3239_v22 = vld [vmem:[%s4443_s7 + $0x20] sm:$0xf] }
 0xa7d   : > { %v4226_v24 = vpop.eup %3507 }
 0xa7e   : > { %v3510_v34 = vpop.eup %3509  ;;  %v2246_v35 = vsel %vm1056_vm1, %v4226_v24, 0.0 }
 0xa7f   : > { %2247 = vadd.xlane.f32.xlu0 %v2246_v35  ;;  %v2243_v36 = vsel %vm1056_vm1, %v3510_v34, 0.0 }
 0xa80   : > { %2244 = vadd.xlane.f32.xlu2 %v2243_v36  ;;  %2214 = vmax.xlane.f32.xlu1 %v2213_v39 }
 0xa88   : > { %2217 = vmax.xlane.f32.xlu2 %v2216_v40 }
 0xa93   : > { %2333 = vrot.lane.b32.xlu0 %v4177_v26, %s4481_s1 }
 0xa99   : > { %2312 = vrot.lane.b32.xlu1 %v4169_v16, %s4481_s1 }
 0xaa0   : > { %2354 = vrot.lane.b32.xlu2 %v4173_v20, %s4481_s1 }
 0xaa1   : > { %2375 = vrot.lane.b32.xlu1 %v4181_v33, %s4481_s1 }
 0xaa9   : > { %2438 = vrot.lane.b32.xlu1 %v4189_v44, %s4481_s1 }
 0xad5   : > { %v2203_v41 = vpop.xlane.xlu0 %2202 }
 0xad6   : > { %v2221_v42 = vsub.f32 %v2071_v63, %v2203_v41 }
 0xad8   : > { %v2231_v43 = vmul.f32 1.442695, %v2221_v42 }
 0xada   : > { %3511 = vpow2.f32 %v2231_v43 }
 0xae0   : > { %v4244_v45 = vpop.eup %3511 }
 0xae1   : > { %v2249_v26 = vsel %vm1056_vm1, %v4244_v45, 0.0 }
 0xae2   : > { %2250 = vadd.xlane.f32.xlu0 %v2249_v26 }
 0xae3   : > { %v2209_v16 = vpop.xlane.xlu1 %2208 }
 0xae4   : > { %v2223_v46 = vsub.f32 %v2119_v9, %v2209_v16  ;;  %v3240_v16 = vld [vmem:[%s4443_s7 + $0x24] sm:$0xf] }
 0xae5   : > { %v2212_v47 = vpop.xlane.xlu0 %2211 }
 0xae6   : > { %v2235_v20 = vmul.f32 1.442695, %v2223_v46  ;;  %v2224_v48 = vsub.f32 %v2143_v12, %v2212_v47 }
 0xae8   : > { %3513 = vpow2.f32 %v2235_v20  ;;  %v2237_v33 = vmul.f32 1.442695, %v2224_v48 }
 0xaea   : > { %3515 = vpow2.f32 %v2237_v33 }
 0xaeb   : > { %v2206_v49 = vpop.xlane.xlu1 %2205 }
 0xaec   : > { %v2222_v44 = vsub.f32 %v4217_v60, %v2206_v49  ;;  %v2499_v49 = vsel %vm1345_vm2, %v3240_v16, 0  ;;  %v3458_v16 = vld [vmem:[%s4444_s8 + $0x1] ss:$0 sm:$0xff] }
 0xaee   : > { %v4248_v62 = vpop.eup %3513  ;;  %v2233_v2 = vmul.f32 1.442695, %v2222_v44 }
 0xaef   : > { %v2255_v50 = vsel %vm1056_vm1, %v4248_v62, 0.0 }
 0xaf0   : > { %2256 = vadd.xlane.f32.xlu0 %v2255_v50  ;;  %v4253_v54 = vpop.eup %3515 }
 0xaf1   : > { %v2258_v57 = vsel %vm1056_vm1, %v4253_v54, 0.0 }
 0xaf2   : > { %v2248_v37 = vpop.xlane.xlu0 %2247 }
 0xaf3   : > { %v2245_v28 = vpop.xlane.xlu2 %2244  ;;  %v2215_v53 = vpop.xlane.xlu1 %2214 }
 0xaf4   : > { %3517 = vrcp.f32 %v2245_v28  ;;  %v2225_v55 = vsub.f32 %v2167_v13, %v2215_v53 }
 0xaf5   : > { %3519 = vpow2.f32 %v2233_v2 }
 0xaf6   : > { %v2239_v56 = vmul.f32 1.442695, %v2225_v55 }
 0xaf8   : > { %3521 = vpow2.f32 %v2239_v56  ;;  %2259 = vadd.xlane.f32.xlu0 %v2258_v57 }
 0xafa   : > { %v3518_v58 = vpop.eup %3517 }
 0xafb   : > { %v2275_v59 = vmul.f32 %v3518_v58, %v3510_v34  ;;  %v2218_v31 = vpop.xlane.xlu2 %2217  ;;  %v3520_v51 = vpop.eup %3519 }
 0xafc   : > { %v2226_v0 = vsub.f32 %v4220_v10, %v2218_v31  ;;  %v2252_v63 = vsel %vm1056_vm1, %v3520_v51, 0.0 }
 0xafd   : > { %v2283_v1 = vpack.c.bf16 %v2275_v59, %v2275_v59 }
 0xafe   : > { %v4258_v3 = vpop.eup %3521  ;;  %v2241_v4 = vmul.f32 1.442695, %v2226_v0 }
 0xaff   : > { %3231 = vmatmul.msk.bf16.vlgmr.msra.gmra.mxu3 %vm1056_vm1, %v2283_v1  ;;  %v2261_v60 = vsel %vm1056_vm1, %v4258_v3, 0.0  ;;  %v3243_v1 = vld [vmem:[%s4443_s7 + $0x30] sm:$0xf] }
 0xb00   : > { %3523 = vpow2.f32 %v2241_v4  ;;  %2262 = vadd.xlane.f32.xlu1 %v2261_v60  ;;  %2253 = vadd.xlane.f32.xlu0 %v2252_v63 }
 0xb01   : > { %3525 = vrcp.f32 %v2248_v37  ;;  %v2556_v37 = vsel %vm1345_vm2, %v3243_v1, 0 }
 0xb03   : > { %v2355_v6 = vpop.permute.xlu2 %2354 }
 0xb04   : > { %v2360_v7 = vsel %vm1345_vm2, %v2355_v6, 0  ;;  %v3244_v6 = vld [vmem:[%s4443_s7 + $0x34] sm:$0xf] }
 0xb05   : > { %2369 = vmatpush.bf16.msrb.mxu2 %v2360_v7  ;;  %v2334_v8 = vpop.permute.xlu0 %2333  ;;  %v2575_v7 = vsel %vm1345_vm2, %v3244_v6, 0 }
 0xb06   : > { %v4265_v9 = vpop.eup %3523  ;;  %v2339_v10 = vsel %vm1345_vm2, %v2334_v8, 0 }
 0xb07   : > { %v3526_v11 = vpop.eup %3525  ;;  %v2264_v12 = vsel %vm1056_vm1, %v4265_v9, 0.0  ;;  %2348 = vmatpush.bf16.msra.mxu1 %v2339_v10 }
 0xb08   : > { %2265 = vadd.xlane.f32.xlu2 %v2264_v12  ;;  %v2276_v13 = vmul.f32 %v3526_v11, %v4226_v24  ;;  %v3246_v11 = vld [vmem:[%s4443_s7 + $0x3c] sm:$0xf] }
 0xb09   : > { %v2613_v12 = vsel %vm1345_vm2, %v3246_v11, 0  ;;  %v3391_v11 = vld [vmem:[%s4449_s13 + $0x78] sm:$0xff] }
 0xb0a   : > { %v2284_v17 = vpack.c.bf16 %v2276_v13, %v2276_v13 }
 0xb0b   : > { %v2313_v14 = vpop.permute.xlu1 %2312 }
 0xb0c   : > { %v2318_v15 = vsel %vm1345_vm2, %v2313_v14, 0 }
 0xb0d   : > { %2327 = vmatpush.bf16.msra.mxu0 %v2318_v15 }
 0xb10   : > { %3232 = vmatmul.msk.bf16.vlgmr.msra.gmra.mxu0 %vm1056_vm1, %v2284_v17 }
 0xb13   : > { %v2376_v18 = vpop.permute.xlu1 %2375 }
 0xb14   : > { %v2381_v19 = vsel %vm1345_vm2, %v2376_v18, 0  ;;  %2417 = vrot.lane.b32.xlu0 %v4197_v52, %s4481_s1  ;;  %v2480_v52 = vsel %vm1345_vm2, %v3239_v22, 0 }
 0xb15   : > { %2390 = vmatpush.bf16.msrb.mxu3 %v2381_v19 }
 0xb19   : > { %2489 = vmatpush.bf16.msra.mxu3 %v2480_v52 }
 0xb1b   : > { %v2439_v23 = vpop.permute.xlu1 %2438 }
 0xb1c   : > { %v2444_v21 = vsel %vm1345_vm2, %v2439_v23, 0 }
 0xb1d   : > { %2453 = vmatpush.bf16.msra.mxu2 %v2444_v21 }
 0xb20   : > { %2396 = vrot.lane.b32.xlu2 %v4187_v38, %s4481_s1  ;;  %s2972_s1 = sshll.u32 %s540_s21, 4 }
 0xb21   : > { %s542_s29 = scalar_lea.vmem [#allocation3], %s2972_s1 }
 0xb22   : > { %s2903_s27 = sshll.u32 %s542_s29, 4  ;;  %s2904_s27 = int_to_ptr.vmem [resolvable:$true] %s2903_s27 }
 0xb55   : > { %v2251_v25 = vpop.xlane.xlu0 %2250 }
 0xb56   : > { %3527 = vrcp.f32 %v2251_v25 }
 0xb5c   : > { %v3528_v29 = vpop.eup %3527 }
 0xb5d   : > { %v2277_v30 = vmul.f32 %v3528_v29, %v4244_v45 }
 0xb5f   : > { %v2285_v32 = vpack.c.bf16 %v2277_v30, %v2277_v30 }
 0xb61   : > { %3233 = vmatmul.msk.bf16.vlgmr.msra.gmra.mxu1 %vm1056_vm1, %v2285_v32 }
 0xb63   : > { %v2257_v24 = vpop.xlane.xlu0 %2256 }
 0xb64   : > { %3529 = vrcp.f32 %v2257_v24 }
 0xb6a   : > { %v3530_v34 = vpop.eup %3529 }
 0xb6b   : > { %v2279_v38 = vmul.f32 %v3530_v34, %v4248_v62  ;;  %v2260_v35 = vpop.xlane.xlu0 %2259 }
 0xb6d   : > { %v2287_v36 = vpack.c.bf16 %v2279_v38, %v2279_v38 }
 0xb6f   : > { %3235 = vmatmul.msk.bf16.vlgmr.msrb.gmra.mxu3 %vm1056_vm1, %v2287_v36 }
 0xb70   : > { %2565 = vmatpush.bf16.msrb.mxu3 %v2556_v37 }
 0xb73   : > { %v2254_v39 = vpop.xlane.xlu0 %2253  ;;  %v2263_v40 = vpop.xlane.xlu1 %2262 }
 0xb74   : > { %3531 = vrcp.f32 %v2254_v39 }
 0xb75   : > { %3533 = vrcp.f32 %v2260_v35 }
 0xb76   : > { %3535 = vrcp.f32 %v2263_v40 }
 0xb7a   : > { %v3532_v41 = vpop.eup %3531 }
 0xb7b   : > { %v2266_v42 = vpop.xlane.xlu2 %2265  ;;  %v2278_v43 = vmul.f32 %v3532_v41, %v3520_v51  ;;  %v3534_v26 = vpop.eup %3533  ;;  %v3241_v51 = vld [vmem:[%s4443_s7 + $0x28] sm:$0xf] }
 0xb7c   : > { %3537 = vrcp.f32 %v2266_v42  ;;  %v3536_v46 = vpop.eup %3535  ;;  %v2280_v47 = vmul.f32 %v3534_v26, %v4253_v54  ;;  %v2518_v0 = vsel %vm1345_vm2, %v3241_v51, 0 }
 0xb7d   : > { %v2286_v45 = vpack.c.bf16 %v2278_v43, %v2278_v43  ;;  %v2281_v44 = vmul.f32 %v3536_v46, %v4258_v3  ;;  %v3242_v3 = vld [vmem:[%s4443_s7 + $0x2c] sm:$0xf] }
 0xb7e   : > { %v2288_v50 = vpack.c.bf16 %v2280_v47, %v2280_v47  ;;  %v2537_v4 = vsel %vm1345_vm2, %v3242_v3, 0 }
 0xb7f   : > { %3234 = vmatmul.msk.bf16.vlgmr.msrb.gmra.mxu2 %vm1056_vm1, %v2286_v45  ;;  %v2289_v54 = vpack.c.bf16 %v2281_v44, %v2281_v44 }
 0xb80   : > { %2546 = vmatpush.bf16.msrb.mxu2 %v2537_v4 }
 0xb82   : > { %v2308_v20 = vpop.f32.mrf.mxu3  ;;  %v3538_v28 = vpop.eup %3537 }
 0xb83   : > { %v2459_v48 = vpack.c.bf16 %v2308_v20, %v2308_v20  ;;  %v2397_v33 = vpop.permute.xlu2 %2396  ;;  %v2282_v55 = vmul.f32 %v3538_v28, %v4265_v9  ;;  %v3245_v9 = vld [vmem:[%s4443_s7 + $0x38] sm:$0xf] }
 0xb84   : > { %v2402_v62 = vsel %vm1345_vm2, %v2397_v33, 0  ;;  %v2594_v10 = vsel %vm1345_vm2, %v3245_v9, 0  ;;  %v3382_v9 = vld [vmem:[%s4447_s11 + $0x10] sm:$0xff] }
 0xb85   : > { %2411 = vmatpush.bf16.msrb.mxu0 %v2402_v62  ;;  %3247 = vmatmul.msk.bf16.vlgmr.msra.gmra.mxu3 %vm1056_vm1, %v2459_v48  ;;  %v2290_v58 = vpack.c.bf16 %v2282_v55, %v2282_v55 }
 0xb86   : > { %v2418_v2 = vpop.permute.xlu0 %2417 }
 0xb87   : > { %v2423_v53 = vsel %vm1345_vm2, %v2418_v2, 0 }
 0xb88   : > { %3236 = vmatmul.msk.bf16.vlgmr.msrb.gmra.mxu0 %vm1056_vm1, %v2288_v50  ;;  %2432 = vmatpush.bf16.msrb.mxu1 %v2423_v53 }
 0xb89   : > { %2508 = vmatpush.bf16.msra.mxu0 %v2499_v49 }
 0xb8a   : > { %v2310_v56 = vpop.f32.mrf.mxu3 }
 0xb8b   : > { %3237 = vmatmul.msk.bf16.vlgmr.msrb.gmra.mxu1 %vm1056_vm1, %v2289_v54 }
 0xb8c   : > { %2527 = vmatpush.bf16.msra.mxu1 %v2518_v0 }
 0xb8d   : > { %v2329_v57 = vpop.f32.mrf.mxu0  ;;  %2584 = vmatpush.bf16.msrb.mxu0 %v2575_v7  ;;  %v3383_v7 = vld [vmem:[%s4447_s11 + $0x18] sm:$0xff] }
 0xb8e   : > { %v2460_v31 = vpack.c.bf16 %v2329_v57, %v2329_v57  ;;  %2733 = vmatpush.bf16.msra.mxu3 %v3383_v7 }
 0xb8f   : > { %3238 = vmatmul.msk.bf16.vlgmr.msra.gmra.mxu2 %vm1056_vm1, %v2290_v58 }
 0xb90   : > { %2603 = vmatpush.bf16.msrb.mxu1 %v2594_v10  ;;  %2622 = vmatpush.bf16.msra.mxu2 %v2613_v12 }
 0xb92   : > { %2734 = vmatpush.bf16.msra.mxu3 %v3382_v9 }
 0xb95   : > { %v2331_v59 = vpop.f32.mrf.mxu0 }
 0xb98   : > { %3248 = vmatmul.msk.bf16.vlgmr.msra.gmra.mxu0 %vm1056_vm1, %v2460_v31 }
 0xb99   : > { %2814 = vmatpush.bf16.msra.mxu0 %v3391_v11 }
 0xbde   : > { %v2350_v60 = vpop.f32.mrf.mxu1 }
 0xbdf   : > { %v2461_v63 = vpack.c.bf16 %v2350_v60, %v2350_v60 }
 0xbe1   : > { %3249 = vmatmul.msk.bf16.vlgmr.msra.gmra.mxu1 %vm1056_vm1, %v2461_v63 }
 0xbe6   : > { %v2352_v8 = vpop.f32.mrf.mxu1 }
 0xbf2   : > { %v2392_v13 = vpop.f32.mrf.mxu3 }
 0xbf3   : > { %v2463_v14 = vpack.c.bf16 %v2392_v13, %v2392_v13 }
 0xbf5   : > { %3251 = vmatmul.msk.bf16.vlgmr.msrb.gmra.mxu3 %vm1056_vm1, %v2463_v14 }
 0xbfa   : > { %v2394_v15 = vpop.f32.mrf.mxu3 }
 0xbfb   : > { %v3390_v15 = vld [vmem:[%s4449_s13 + $0x70] sm:$0xff] }
 0xbfc   : > { %2815 = vmatpush.bf16.msra.mxu0 %v3390_v15 }
 0xc02   : > { %v2371_v17 = vpop.f32.mrf.mxu2 }
 0xc03   : > { %v2462_v18 = vpack.c.bf16 %v2371_v17, %v2371_v17 }
 0xc05   : > { %v2413_v19 = vpop.f32.mrf.mxu0  ;;  %3250 = vmatmul.msk.bf16.vlgmr.msrb.gmra.mxu2 %vm1056_vm1, %v2462_v18 }
 0xc06   : > { %v2464_v23 = vpack.c.bf16 %v2413_v19, %v2413_v19  ;;  %v3389_v19 = vld [vmem:[%s4449_s13 + $0x68] sm:$0xff] }
 0xc07   : > { %2816 = vmatpush.bf16.msra.mxu0 %v3389_v19 }
 0xc08   : > { %v2491_v21 = vpop.f32.mrf.mxu3  ;;  %3252 = vmatmul.msk.bf16.vlgmr.msrb.gmra.mxu0 %vm1056_vm1, %v2464_v23  ;;  %v2434_v25 = vpop.f32.mrf.mxu1 }
 0xc09   : > { %v2465_v29 = vpack.c.bf16 %v2434_v25, %v2434_v25 }
 0xc0a   : > { %v2373_v30 = vpop.f32.mrf.mxu2 }
 0xc0b   : > { %3253 = vmatmul.msk.bf16.vlgmr.msrb.gmra.mxu1 %vm1056_vm1, %v2465_v29 }
 0xc0d   : > { %v2415_v32 = vpop.f32.mrf.mxu0 }
 0xc10   : > { %v2493_v22 = vpop.f32.mrf.mxu3  ;;  %v2436_v52 = vpop.f32.mrf.mxu1 }
 0xc12   : > { %v2455_v24 = vpop.f32.mrf.mxu2 }
 0xc13   : > { %v2466_v34 = vpack.c.bf16 %v2455_v24, %v2455_v24 }
 0xc15   : > { %v2510_v38 = vpop.f32.mrf.mxu0  ;;  %3254 = vmatmul.msk.bf16.vlgmr.msra.gmra.mxu2 %vm1056_vm1, %v2466_v34  ;;  %v3459_v34 = vld [vmem:[%s4445_s9 + $0x1] ss:$0 sm:$0xff] }
 0xc1a   : > { %v2457_v35 = vpop.f32.mrf.mxu2 }
 0xc1d   : > { %v2512_v36 = vpop.f32.mrf.mxu0 }
 0xc5e   : > { %v2529_v39 = vpop.f32.mrf.mxu1 }
 0xc5f   : > { %v2628_v43 = vadd.f32 %v2529_v39, %v2491_v21  ;;  %v3388_v21 = vld [vmem:[%s4449_s13 + $0x60] sm:$0xff] }
 0xc60   : > { %2817 = vmatpush.bf16.msra.mxu0 %v3388_v21  ;;  %v3460_v39 = vld [vmem:[%s4446_s10 + $0x1] ss:$0 sm:$0xff] }
 0xc66   : > { %v2531_v40 = vpop.f32.mrf.mxu1 }
 0xc78   : > { %v2567_v41 = vpop.f32.mrf.mxu3 }
 0xc79   : > { %v2630_v26 = vadd.f32 %v2628_v43, %v2567_v41 }
 0xc80   : > { %v2569_v42 = vpop.f32.mrf.mxu3 }
 0xc85   : > { %v2586_v45 = vpop.f32.mrf.mxu0 }
 0xc88   : > { %v2605_v46 = vpop.f32.mrf.mxu1  ;;  %v2548_v47 = vpop.f32.mrf.mxu2 }
 0xc89   : > { %v2632_v20 = vadd.f32 %v2630_v26, %v2605_v46  ;;  %v2629_v2 = vadd.f32 %v2548_v47, %v2510_v38  ;;  %v3386_v46 = vld [vmem:[%s4449_s13 + $0x50] sm:$0xff]  ;;  %v3385_v47 = vld [vmem:[%s4449_s13 + $0x48] sm:$0xff] }
 0xc8b   : > { %v2639_v48 = vadd.f32 %v3458_v16, %v2632_v20  ;;  %v2631_v28 = vadd.f32 %v2629_v2, %v2586_v45  ;;  %v3384_v20 = vld [vmem:[%s4449_s13 + $0x40] sm:$0xff] }
 0xc8d   : > { %v2588_v33 = vpop.f32.mrf.mxu0  ;;  %v2641_v49 = vadd.f32 %v2639_v48, %v4152_v5 }
 0xc8e   : > { %v3461_v33 = vld [vmem:[%s4448_s12 + $0x1] ss:$0 sm:$0xff] }
 0xc8f   : > { %v2647_v62 = vsel %vm1005_vm0, %v2641_v49, 0.0 }
 0xc90   : > { %2648 = vadd.xlane.f32.xlu2 %v2647_v62  ;;  %v2607_v44 = vpop.f32.mrf.mxu1  ;;  %v2550_v50 = vpop.f32.mrf.mxu2 }
 0xc98   : > { %v2624_v53 = vpop.f32.mrf.mxu2 }
 0xc99   : > { %v2633_v54 = vadd.f32 %v2631_v28, %v2624_v53  ;;  %v3462_v53 = vld [vmem:[%s4450_s14 + $0x1] ss:$0 sm:$0xff] }
 0xc9b   : > { %v2640_v55 = vadd.f32 %v3458_v16, %v2633_v54  ;;  %v3387_v16 = vld [vmem:[%s4449_s13 + $0x58] sm:$0xff] }
 0xc9c   : > { %2818 = vmatpush.bf16.msra.mxu0 %v3387_v16 }
 0xc9d   : > { %v2642_v56 = vadd.f32 %v2640_v55, %v4154_v61 }
 0xc9f   : > { %v2650_v57 = vsel %vm1005_vm0, %v2642_v56, 0.0 }
 0xca0   : > { %2651 = vadd.xlane.f32.xlu1 %v2650_v57  ;;  %v2626_v58 = vpop.f32.mrf.mxu2  ;;  %2819 = vmatpush.bf16.msra.mxu0 %v3386_v46 }
 0xca4   : > { %2820 = vmatpush.bf16.msra.mxu0 %v3385_v47 }
 0xca8   : > { %2821 = vmatpush.bf16.msra.mxu0 %v3384_v20 }
 0xd03   : > { %v2649_v59 = vpop.xlane.xlu2 %2648 }
 0xd04   : > { %v2653_v31 = vmul.f32 %v2649_v59, %v4081_v27 }
 0xd06   : > { %v2655_v5 = vsub.f32 %v2641_v49, %v2653_v31 }
 0xd08   : > { %v2657_v51 = vmul.f32 %v2655_v5, %v2655_v5 }
 0xd0a   : > { %v2659_v0 = vsel %vm1005_vm0, %v2657_v51, 0.0 }
 0xd0b   : > { %2660 = vadd.xlane.f32.xlu1 %v2659_v0 }
 0xd13   : > { %v2652_v1 = vpop.xlane.xlu1 %2651 }
 0xd14   : > { %v2654_v37 = vmul.f32 %v2652_v1, %v4081_v27 }
 0xd16   : > { %v2656_v3 = vsub.f32 %v2642_v56, %v2654_v37 }
 0xd18   : > { %v2658_v4 = vmul.f32 %v2656_v3, %v2656_v3 }
 0xd1a   : > { %v2662_v60 = vsel %vm1005_vm0, %v2658_v4, 0.0 }
 0xd1b   : > { %2663 = vadd.xlane.f32.xlu1 %v2662_v60 }
 0xd7e   : > { %v2661_v61 = vpop.xlane.xlu1 %2660 }
 0xd7f   : > { %v2665_v63 = vmul.f32 %v2661_v61, %v4081_v27 }
 0xd81   : > { %v2667_v6 = vadd.f32 1e-05, %v2665_v63 }
 0xd83   : > { %3539 = vrsqrt.f32 %v2667_v6  ;;  %vm2675_vm2 = vweird.f32 %v2667_v6 }
 0xd89   : > { %v3540_v8 = vpop.eup %3539 }
 0xd8a   : > { %v2670_v10 = vmul.f32 %v3540_v8, %v2667_v6  ;;  %vm2676_vm1 = vweird.f32 %v3540_v8 }
 0xd8b   : > { %vm2677_vm3 = vmor %vm2675_vm2, %vm2676_vm1 }
 0xd8c   : > { %v2671_v12 = vmul.f32 %v3540_v8, %v2670_v10 }
 0xd8e   : > { %v2664_v13 = vpop.xlane.xlu1 %2663  ;;  %v2672_v18 = vmul.f32 0.5, %v2671_v12 }
 0xd8f   : > { %v2666_v14 = vmul.f32 %v2664_v13, %v4081_v27 }
 0xd90   : > { %v2673_v23 = vsub.f32 1.5, %v2672_v18 }
 0xd91   : > { %v2668_v17 = vadd.f32 1e-05, %v2666_v14 }
 0xd92   : > { %v2674_v29 = vmul.f32 %v3540_v8, %v2673_v23 }
 0xd93   : > { %3541 = vrsqrt.f32 %v2668_v17  ;;  %vm2685_vm5 = vweird.f32 %v2668_v17 }
 0xd94   : > { %v2678_v22 = vsel %vm2677_vm3, %v3540_v8, %v2674_v29 }
 0xd95   : > { %v2689_v38 = vmul.f32 %v2678_v22, %v2655_v5 }
 0xd97   : > { %v2694_v40 = vmul.f32 %v3459_v34, %v2689_v38 }
 0xd99   : > { %v3542_v25 = vpop.eup %3541  ;;  %v2699_v43 = vadd.f32 %v3460_v39, %v2694_v40 }
 0xd9a   : > { %v2680_v30 = vmul.f32 %v3542_v25, %v2668_v17  ;;  %vm2686_vm4 = vweird.f32 %v3542_v25 }
 0xd9b   : > { %vm2687_vm6 = vmor %vm2685_vm5, %vm2686_vm4 }
 0xd9c   : > { %v2681_v32 = vmul.f32 %v3542_v25, %v2680_v30  ;;  %v3464_v30 = vld [vmem:[%s4452_s16 + $0x1] ss:$0 sm:$0xff] }
 0xd9e   : > { %v2682_v52 = vmul.f32 0.5, %v2681_v32 }
 0xda0   : > { %v2683_v24 = vsub.f32 1.5, %v2682_v52 }
 0xda2   : > { %v2684_v35 = vmul.f32 %v3542_v25, %v2683_v24 }
 0xda4   : > { %v2688_v36 = vsel %vm2687_vm6, %v3542_v25, %v2684_v35  ;;  %v3463_v25 = vld [vmem:[%s4451_s15 + $0x1] ss:$0 sm:$0xff] }
 0xda5   : > { %v2690_v41 = vmul.f32 %v2688_v36, %v2656_v3 }
 0xda7   : > { %v2695_v42 = vmul.f32 %v3459_v34, %v2690_v41 }
 0xda9   : > { %v2700_v45 = vadd.f32 %v3460_v39, %v2695_v42 }
 0xdab   : > { %v2701_v26 = vpack.c.bf16 %v2700_v45, %v2699_v43 }
 0xdad   : > { %3271 = vmatmul.msk.bf16.vlgmr.msra.gmra.mxu3 %vm1005_vm0, %v2701_v26 }
 0xe30   : > { %v2736_v48 = vpop.f32.mrf.mxu3 }
 0xe31   : > { %v2737_v49 = vadd.f32 %v3461_v33, %v2736_v48 }
 0xe33   : > { %v2741_v50 = vmax.f32 %v2737_v49, 0.0 }
 0xe38   : > { %v2738_v62 = vpop.f32.mrf.mxu3 }
 0xe39   : > { %v2739_v44 = vadd.f32 %v3461_v33, %v2738_v62 }
 0xe3b   : > { %v2742_v2 = vmax.f32 %v2739_v44, 0.0 }
 0xe3d   : > { %v2743_v28 = vpack.c.bf16 %v2742_v2, %v2741_v50 }
 0xe3f   : > { %2822 = vmatmul.bf16.vlgmr.msra.gmra.mxu0 %v2743_v28 }
 0xebc   : > { %v2823_v54 = vpop.f32.mrf.mxu0 }
 0xebd   : > { %v2824_v55 = vadd.f32 %v3462_v53, %v2823_v54 }
 0xebf   : > { %v2828_v56 = vadd.f32 %v2824_v55, %v2699_v43 }
 0xec1   : > { %v2834_v57 = vsel %vm1005_vm0, %v2828_v56, 0.0 }
 0xec2   : > { %2835 = vadd.xlane.f32.xlu0 %v2834_v57 }
 0xec4   : > { %v2825_v58 = vpop.f32.mrf.mxu0 }
 0xec5   : > { %v2826_v59 = vadd.f32 %v3462_v53, %v2825_v58 }
 0xec7   : > { %v2829_v31 = vadd.f32 %v2826_v59, %v2700_v45 }
 0xec9   : > { %v2837_v5 = vsel %vm1005_vm0, %v2829_v31, 0.0 }
 0xeca   : > { %2838 = vadd.xlane.f32.xlu1 %v2837_v5 }
 0xf35   : > { %v2836_v51 = vpop.xlane.xlu0 %2835 }
 0xf36   : > { %v2840_v0 = vmul.f32 %v2836_v51, %v4081_v27 }
 0xf38   : > { %v2842_v1 = vsub.f32 %v2828_v56, %v2840_v0 }
 0xf3a   : > { %v2844_v37 = vmul.f32 %v2842_v1, %v2842_v1 }
 0xf3c   : > { %v2846_v3 = vsel %vm1005_vm0, %v2844_v37, 0.0 }
 0xf3d   : > { %v2839_v4 = vpop.xlane.xlu1 %2838  ;;  %2847 = vadd.xlane.f32.xlu1 %v2846_v3 }
 0xf3e   : > { %v2841_v60 = vmul.f32 %v2839_v4, %v4081_v27 }
 0xf40   : > { %v2843_v61 = vsub.f32 %v2829_v31, %v2841_v60 }
 0xf42   : > { %v2845_v63 = vmul.f32 %v2843_v61, %v2843_v61 }
 0xf44   : > { %v2849_v6 = vsel %vm1005_vm0, %v2845_v63, 0.0 }
 0xf45   : > { %2850 = vadd.xlane.f32.xlu2 %v2849_v6 }
 0xfb0   : > { %v2848_v7 = vpop.xlane.xlu1 %2847 }
 0xfb1   : > { %v2852_v8 = vmul.f32 %v2848_v7, %v4081_v27 }
 0xfb3   : > { %v2854_v9 = vadd.f32 1e-05, %v2852_v8 }
 0xfb5   : > { %3543 = vrsqrt.f32 %v2854_v9  ;;  %vm2862_vm8 = vweird.f32 %v2854_v9 }
 0xfb8   : > { %v2851_v10 = vpop.xlane.xlu2 %2850 }
 0xfb9   : > { %v2853_v11 = vmul.f32 %v2851_v10, %v4081_v27 }
 0xfbb   : > { %v3544_v12 = vpop.eup %3543  ;;  %v2855_v13 = vadd.f32 1e-05, %v2853_v11 }
 0xfbc   : > { %v2857_v14 = vmul.f32 %v3544_v12, %v2854_v9  ;;  %vm2863_vm7 = vweird.f32 %v3544_v12 }
 0xfbd   : > { %3545 = vrsqrt.f32 %v2855_v13  ;;  %vm2864_vm9 = vmor %vm2862_vm8, %vm2863_vm7  ;;  %vm2872_vm11 = vweird.f32 %v2855_v13 }
 0xfbe   : > { %v2858_v15 = vmul.f32 %v3544_v12, %v2857_v14 }
 0xfc0   : > { %v2859_v17 = vmul.f32 0.5, %v2858_v15 }
 0xfc2   : > { %v2860_v18 = vsub.f32 1.5, %v2859_v17 }
 0xfc3   : > { %v3546_v19 = vpop.eup %3545 }
 0xfc4   : > { %v2861_v23 = vmul.f32 %v3544_v12, %v2860_v18  ;;  %v2867_v21 = vmul.f32 %v3546_v19, %v2855_v13  ;;  %vm2873_vm10 = vweird.f32 %v3546_v19 }
 0xfc5   : > { %vm2874_vm12 = vmor %vm2872_vm11, %vm2873_vm10 }
 0xfc6   : > { %v2865_v27 = vsel %vm2864_vm9, %v3544_v12, %v2861_v23  ;;  %v2868_v29 = vmul.f32 %v3546_v19, %v2867_v21 }
 0xfc7   : > { %v2876_v32 = vmul.f32 %v2865_v27, %v2842_v1 }
 0xfc8   : > { %v2869_v22 = vmul.f32 0.5, %v2868_v29 }
 0xfc9   : > { %v2881_v52 = vmul.f32 %v3463_v25, %v2876_v32 }
 0xfca   : > { %v2870_v24 = vsub.f32 1.5, %v2869_v22 }
 0xfcb   : > { %v2886_v34 = vadd.f32 %v3464_v30, %v2881_v52 }
 0xfcc   : > { %v2871_v38 = vmul.f32 %v3546_v19, %v2870_v24 }
 0xfcd   : > { %2888 = vst.msk [vmem:[%s542_s29] sm:$0xff] %vm1005_vm0, %v2886_v34 }
 0xfce   : > { %v2875_v35 = vsel %vm2874_vm12, %v3546_v19, %v2871_v38 }
 0xfcf   : > { %v2877_v36 = vmul.f32 %v2875_v35, %v2843_v61 }
 0xfd1   : > { %v2882_v39 = vmul.f32 %v3463_v25, %v2877_v36 }
 0xfd3   : > { %v2887_v40 = vadd.f32 %v3464_v30, %v2882_v39 }
 0xfd5   : > { %2889 = vst.msk [vmem:[%s542_s29 + $0x8] sm:$0xff] %vm1005_vm0, %v2887_v40 }
 0xfd6   : > { %3574 = shalt.err (!%p3571_p3)
}
 0xfd7   : > { %s3618_s21 = smov 128   ;;  %s3619_s20 = smov 8  }
 0xfd8   : > { %3393 = dma.vmem_to_hbm [thread:$0]  (%p3748_p5), %s2904_s27, 256, %s2906_s30, %s2891_s28, %s3618_s21, %s3618_s21, %s3619_s20  }
 0xfd9 PF: > { %s4483_s29 = sld [smem:[#allocation8_spill]] }
 0xfda   : > { %s4484_s2 = sld [smem:[#allocation6_spill]] }
 0xfdf   : > { %p3399_p4 = scmp.ge.s32.totalorder %s4483_s29, 2 }
 0xfe0   : > { %s2920_s24 = sand.u32 1, %s4484_s2  }
 0xfe1   : > { %p3396_p7 = pnand %p3399_p4, %p3752_p6  ;;  %s2921_s1 = scalar_lea.sflag [#allocation4], %s2920_s24 }
 0xfe3   : > { %p3397_p8 = pneg %p3396_p7 }
 0xfe5   : > { %3592 = dma.done.wait (%p3397_p8), %s2921_s1, 256  }
 0xfe6   : > { %3594 = vsyncadd (%p3397_p8), %s2921_s1, 4294967040  ;;  %s4486_s27 = sld [smem:[#allocation9_spill]]  ;;  %s4489_s24 = smov %s3601_s25 }
 0xfe7   : > { %s4487_s22 = sld [smem:[#allocation7_spill]] }
 0xfe8   : > { %s4488_s26 = sld [smem:[#allocation10_spill]] }
 0xfec   : > { %p27_p9 = scmp.ge.s32.totalorder %s4486_s27, 4  }
 0xfed   : > { %s4490_s25 = smov %s4487_s22 }
 0xfee   :  { %29 = sbr.rel (!%p27_p9) target bundleno = 8 (0x8), region = 135 }
 0xff3   :  { %2927 = vsyncpa [#allocation4], 1 }
 0xff4   :  { %2929 = vsyncpa [#allocation4 + $0x1], 1 }

</bundles_post_ra>
